<compile_context>
chip_gen: v5e
topology: v5e:2x2
jax: 0.10.0
libtpu: 0.0.40
codegen_flags: <defaults>
</compile_context>

<pallas_src>
import functools

import jax
import jax.numpy as jnp
from jax.experimental import pallas as pl
from jax.experimental.pallas import tpu as pltpu

EPS = 1e-5
VMEM_LIMIT = 48 * 1024 * 1024   # safe on v7x (64 MiB physical); demo uses <1 MiB


# ------------------------------ fused kernel ------------------------------- #
def _bottleneck_kernel(*refs, H, W, Cin, Cmid, Cout, stride, th, has_proj):
    """One grid step = one (image n, output-row tile t) of the whole block."""
    if has_proj:
        (x_ref, w1_ref, w2_ref, w3_ref, ws_ref,
         sb1_ref, sb2_ref, sb3_ref, sbs_ref, o_ref, o1_ref) = refs
    else:
        (x_ref, w1_ref, w2_ref, w3_ref,
         sb1_ref, sb2_ref, sb3_ref, o_ref, o1_ref) = refs
        ws_ref = sbs_ref = None

    s = stride
    Wo = (W - 1) // s + 1
    t = pl.program_id(1)

    # ---- conv1 (1x1) + bn1 + relu over the whole image, once per n --------- #
    # Written into a zero-padded VMEM scratch: the zero border doubles as the
    # conv2 padding, so no jnp.pad and no halo DMA are needed.
    @pl.when(t == 0)
    def _():
        o1_ref[...] = jnp.zeros_like(o1_ref)
        xm = x_ref[0].reshape(H * W, Cin).astype(jnp.bfloat16)
        a1 = jnp.dot(xm, w1_ref[...], preferred_element_type=jnp.float32)
        a1 = jnp.maximum(a1 * sb1_ref[0:1, :] + sb1_ref[1:2, :], 0.0)
        o1_ref[1:H + 1, 1:W + 1, :] = a1.reshape(H, W, Cmid)

    # ---- conv2 (3x3, stride s, pad 1) + bn2 + relu for this row tile ------- #
    rp = s * (th - 1) + 3                         # padded out1 rows this tile needs
    row0 = pl.multiple_of(t * th * s, th * s)     # first padded out1 row (in-range)
    slab = o1_ref[pl.ds(row0, rp), :, :]          # (rp, W+2, Cmid) f32

    taps = []
    for kh in range(3):
        for dw in range(3):
            tap = slab[kh:kh + s * (th - 1) + 1:s,
                       dw:dw + s * (Wo - 1) + 1:s, :]      # (th, Wo, Cmid)
            taps.append(tap.reshape(th * Wo, Cmid))
    lhs2 = jnp.concatenate(taps, axis=-1).astype(jnp.bfloat16)   # (th*Wo, 9*Cmid)
    a2 = jnp.dot(lhs2, w2_ref[...], preferred_element_type=jnp.float32)
    a2 = jnp.maximum(a2 * sb2_ref[0:1, :] + sb2_ref[1:2, :], 0.0)

    # ---- conv3 (1x1) + bn3 -------------------------------------------------- #
    a3 = jnp.dot(a2.astype(jnp.bfloat16), w3_ref[...],
                 preferred_element_type=jnp.float32)
    a3 = a3 * sb3_ref[0:1, :] + sb3_ref[1:2, :]

    # ---- shortcut (fused, never touches HBM) + relu ------------------------- #
    xs = x_ref[0, pl.ds(row0, s * (th - 1) + 1), :, :]     # input rows s*h0 ...
    xs = xs[::s, ::s, :].reshape(th * Wo, Cin)
    if has_proj:
        asc = jnp.dot(xs.astype(jnp.bfloat16), ws_ref[...],
                      preferred_element_type=jnp.float32)
        a3 = a3 + asc * sbs_ref[0:1, :] + sbs_ref[1:2, :]
    else:
        a3 = a3 + xs                                       # identity: Cin == Cout, s == 1

    o_ref[...] = jnp.maximum(a3, 0.0).astype(o_ref.dtype)  # (th*Wo, Cout)


# ------------------------------- JAX glue ----------------------------------- #
def _fold_bn(bn):
    gamma, beta, mean, var = bn
    scale = gamma / jnp.sqrt(var + EPS)
    bias = beta - mean * scale
    return jnp.stack([scale, bias]).astype(jnp.float32)    # (2, C)


def _pick_th(Ho, Wo):
    """Output-row tile: >=2 tiles per image when possible, sublane-friendly."""
    cands = [c for c in range(1, Ho + 1)
             if Ho % c == 0 and (c * Wo) % 8 == 0 and c * Wo <= 1024]
    if not cands:
        return Ho
    multi = [c for c in cands if Ho // c >= 2]
    return max(multi) if multi else max(cands)


def bottleneck_forward(x_nchw, params, stride=1):
    N, Cin, H, W = x_nchw.shape
    Cmid = params["w1"].shape[0]
    Cout = 4 * Cmid
    s = stride
    Ho = (H - 1) // s + 1
    Wo = (W - 1) // s + 1
    th = _pick_th(Ho, Wo)
    HT = Ho // th
    has_proj = (s != 1) or (Cin != Cout)

    # TODO(synk): keep activations NHWC across chained blocks; this transpose
    # only adapts the PyTorch NCHW interface.
    x = jnp.transpose(x_nchw, (0, 2, 3, 1))                # NHWC f32

    # Weights stay un-scaled bf16; BN scale/bias applied in the f32 epilogue.
    w1 = params["w1"].reshape(Cmid, Cin).T.astype(jnp.bfloat16)          # (Cin, Cmid)
    w2 = (jnp.transpose(params["w2"], (2, 3, 1, 0))
          .reshape(9 * Cmid, Cmid).astype(jnp.bfloat16))                 # (9*Cmid, Cmid)
    w3 = params["w3"].reshape(Cout, Cmid).T.astype(jnp.bfloat16)         # (Cmid, Cout)
    sb1, sb2, sb3 = (_fold_bn(params["bn1"]), _fold_bn(params["bn2"]),
                     _fold_bn(params["bn3"]))

    args = [x, w1, w2, w3]
    in_specs = [
        pl.BlockSpec((1, H, W, Cin), lambda n, t: (n, 0, 0, 0)),  # fetched once per n
        pl.BlockSpec((Cin, Cmid), lambda n, t: (0, 0)),
        pl.BlockSpec((9 * Cmid, Cmid), lambda n, t: (0, 0)),
        pl.BlockSpec((Cmid, Cout), lambda n, t: (0, 0)),
    ]
    if has_proj:
        ws = params["ws"].reshape(Cout, Cin).T.astype(jnp.bfloat16)      # (Cin, Cout)
        args.append(ws)
        in_specs.append(pl.BlockSpec((Cin, Cout), lambda n, t: (0, 0)))
    args += [sb1, sb2, sb3]
    in_specs += [
        pl.BlockSpec((2, Cmid), lambda n, t: (0, 0)),
        pl.BlockSpec((2, Cmid), lambda n, t: (0, 0)),
        pl.BlockSpec((2, Cout), lambda n, t: (0, 0)),
    ]
    if has_proj:
        args.append(_fold_bn(params["bns"]))
        in_specs.append(pl.BlockSpec((2, Cout), lambda n, t: (0, 0)))

    kernel = functools.partial(
        _bottleneck_kernel, H=H, W=W, Cin=Cin, Cmid=Cmid, Cout=Cout,
        stride=s, th=th, has_proj=has_proj)

    out2d = pl.pallas_call(
        kernel,
        out_shape=jax.ShapeDtypeStruct((N * Ho * Wo, Cout), jnp.float32),
        grid_spec=pltpu.PrefetchScalarGridSpec(
            num_scalar_prefetch=0,
            grid=(N, HT),
            in_specs=in_specs,
            out_specs=pl.BlockSpec((th * Wo, Cout),
                                   lambda n, t, HT=HT: (n * HT + t, 0)),
            scratch_shapes=[pltpu.VMEM((H + 2, W + 2, Cmid), jnp.float32)],
        ),
        compiler_params=pltpu.CompilerParams(
            dimension_semantics=("parallel", "arbitrary"),
            vmem_limit_bytes=VMEM_LIMIT),
    )(*args)

    out = out2d.reshape(N, Ho, Wo, Cout)
    return jnp.transpose(out, (0, 3, 1, 2))                # -> NCHW (interface only)


# ----------------------------- reference (NCHW) ----------------------------- #
def _conv_ref(x, w, stride, pad):
    return jax.lax.conv_general_dilated(
        x, w, (stride, stride), [(pad, pad), (pad, pad)],
        dimension_numbers=("NCHW", "OIHW", "NCHW"))


def _bn_ref(x, bn):
    gamma, beta, mean, var = bn
    inv = gamma / jnp.sqrt(var + EPS)
    return (x - mean[None, :, None, None]) * inv[None, :, None, None] \
        + beta[None, :, None, None]


def bottleneck_ref(x, params, stride=1):
    Cin = x.shape[1]
    Cout = 4 * params["w1"].shape[0]
    out = jax.nn.relu(_bn_ref(_conv_ref(x, params["w1"], 1, 0), params["bn1"]))
    out = jax.nn.relu(_bn_ref(_conv_ref(out, params["w2"], stride, 1),
                              params["bn2"]))
    out = _bn_ref(_conv_ref(out, params["w3"], 1, 0), params["bn3"])
    if stride != 1 or Cin != Cout:
        sc = _bn_ref(_conv_ref(x, params["ws"], stride, 0), params["bns"])
    else:
        sc = x
    return jax.nn.relu(out + sc)


# ---------------------------------- main ------------------------------------ #
def _make_bn(key, c):
    k1, k2, k3, k4 = jax.random.split(key, 4)
    gamma = 1.0 + 0.1 * jax.random.normal(k1, (c,), jnp.float32)
    beta = 0.1 * jax.random.normal(k2, (c,), jnp.float32)
    mean = 0.1 * jax.random.normal(k3, (c,), jnp.float32)
    var = 0.5 + jnp.abs(jax.random.normal(k4, (c,), jnp.float32))
    return (gamma, beta, mean, var)


if __name__ == "__main__":
    key = jax.random.PRNGKey(0)
    in_dim, out_dim, stride = 4, 8, 1            # expansion*out_dim = 32 != in_dim
    N, H, W = 2, 16, 16

    ks = jax.random.split(key, 10)
    params = {
        "w1": 0.1 * jax.random.normal(ks[0], (out_dim, in_dim, 1, 1), jnp.float32),
        "w2": 0.1 * jax.random.normal(ks[1], (out_dim, out_dim, 3, 3), jnp.float32),
        "w3": 0.1 * jax.random.normal(ks[2], (4 * out_dim, out_dim, 1, 1), jnp.float32),
        "ws": 0.1 * jax.random.normal(ks[3], (4 * out_dim, in_dim, 1, 1), jnp.float32),
        "bn1": _make_bn(ks[4], out_dim),
        "bn2": _make_bn(ks[5], out_dim),
        "bn3": _make_bn(ks[6], 4 * out_dim),
        "bns": _make_bn(ks[7], 4 * out_dim),
    }

    x = jax.random.normal(ks[8], (N, in_dim, H, W), jnp.float32)

    out = jax.block_until_ready(bottleneck_forward(x, params, stride=stride))
    ref = jax.block_until_ready(bottleneck_ref(x, params, stride=stride))

    assert out.shape == (N, 4 * out_dim, H // stride, W // stride), out.shape
    # bf16 MXU operands (f32 accumulation) -> loosened tolerance vs f32 reference.
    assert jnp.allclose(out, ref, rtol=2e-2, atol=2e-2), \
        float(jnp.max(jnp.abs(out - ref)))

    print("KERNEL_OK")
</pallas_src>

<mosaic_0001>
module attributes {stable_mosaic.version = 11 : i64} {
  func.func @_bottleneck_kernel(%arg0: i32, %arg1: i32, %arg2: memref<1x16x16x4xf32, #tpu.memory_space<vmem>>, %arg3: memref<4x8xbf16, #tpu.memory_space<vmem>>, %arg4: memref<72x8xbf16, #tpu.memory_space<vmem>>, %arg5: memref<8x32xbf16, #tpu.memory_space<vmem>>, %arg6: memref<4x32xbf16, #tpu.memory_space<vmem>>, %arg7: memref<2x8xf32, #tpu.memory_space<vmem>>, %arg8: memref<2x8xf32, #tpu.memory_space<vmem>>, %arg9: memref<2x32xf32, #tpu.memory_space<vmem>>, %arg10: memref<2x32xf32, #tpu.memory_space<vmem>>, %arg11: memref<128x32xf32, #tpu.memory_space<vmem>>, %arg12: memref<18x18x8xf32, #tpu.memory_space<vmem>>) attributes {dimension_semantics = [#tpu.dimension_semantics<parallel>, #tpu.dimension_semantics<arbitrary>], iteration_bounds = array<i64: 2, 2>, scalar_prefetch = 0 : i64, scratch_operands = 1 : i64, tpu.core_type = #tpu.core_type<tc>, window_params = [{transform_indices = @transform_0, window_bounds = array<i64: 1, 16, 16, 4>}, {pipeline_mode = #tpu.pipeline_mode<synchronous>, transform_indices = @transform_1, window_bounds = array<i64: 4, 8>}, {pipeline_mode = #tpu.pipeline_mode<synchronous>, transform_indices = @transform_2, window_bounds = array<i64: 72, 8>}, {pipeline_mode = #tpu.pipeline_mode<synchronous>, transform_indices = @transform_3, window_bounds = array<i64: 8, 32>}, {pipeline_mode = #tpu.pipeline_mode<synchronous>, transform_indices = @transform_4, window_bounds = array<i64: 4, 32>}, {pipeline_mode = #tpu.pipeline_mode<synchronous>, transform_indices = @transform_5, window_bounds = array<i64: 2, 8>}, {pipeline_mode = #tpu.pipeline_mode<synchronous>, transform_indices = @transform_6, window_bounds = array<i64: 2, 8>}, {pipeline_mode = #tpu.pipeline_mode<synchronous>, transform_indices = @transform_7, window_bounds = array<i64: 2, 32>}, {pipeline_mode = #tpu.pipeline_mode<synchronous>, transform_indices = @transform_8, window_bounds = array<i64: 2, 32>}, {transform_indices = @transform_9, window_bounds = array<i64: 128, 32>}]} {
    %c0_i32 = arith.constant 0 : i32
    %0 = arith.cmpi eq, %arg1, %c0_i32 : i32
    %1 = arith.extui %0 : i1 to i32
    %c0_i32_0 = arith.constant 0 : i32
    %2 = arith.cmpi ne, %1, %c0_i32_0 : i32
    scf.if %2 {
      %cst_28 = arith.constant 0.000000e+00 : f32
      %64 = vector.broadcast %cst_28 : f32 to vector<18x18x8xf32>
      %c0_29 = arith.constant 0 : index
      %c0_30 = arith.constant 0 : index
      %c0_31 = arith.constant 0 : index
      %65 = vector.load %arg12[%c0_29, %c0_30, %c0_31] : memref<18x18x8xf32, #tpu.memory_space<vmem>>, vector<18x18x8xf32>
      tpu.vector_store %arg12[%c0_29, %c0_30, %c0_31], %64 {strides = array<i32>} : memref<18x18x8xf32, #tpu.memory_space<vmem>>, vector<18x18x8xf32>,
      %c0_32 = arith.constant 0 : index
      %c0_33 = arith.constant 0 : index
      %c0_34 = arith.constant 0 : index
      %c0_35 = arith.constant 0 : index
      %66 = vector.load %arg2[%c0_32, %c0_33, %c0_34, %c0_35] : memref<1x16x16x4xf32, #tpu.memory_space<vmem>>, vector<1x16x16x4xf32>
      %67 = vector.shape_cast %66 : vector<1x16x16x4xf32> to vector<16x16x4xf32>
      %68 = vector.shape_cast %67 : vector<16x16x4xf32> to vector<256x4xf32>
      %69 = arith.truncf %68 : vector<256x4xf32> to vector<256x4xbf16>
      %c0_36 = arith.constant 0 : index
      %c0_37 = arith.constant 0 : index
      %70 = vector.load %arg3[%c0_36, %c0_37] : memref<4x8xbf16, #tpu.memory_space<vmem>>, vector<4x8xbf16>
      %cst_38 = arith.constant dense<0.000000e+00> : vector<256x8xf32>
      %71 = tpu.matmul %69, %70, %cst_38 {dimension_numbers = #tpu.dot_dimension_numbers<[1], [0], [0], [1], [0, 0, 1, 1], [], []>} : vector<256x4xbf16>, vector<4x8xbf16>, vector<256x8xf32> -> vector<256x8xf32>
      %c0_39 = arith.constant 0 : index
      %c0_40 = arith.constant 0 : index
      %72 = vector.load %arg7[%c0_39, %c0_40] : memref<2x8xf32, #tpu.memory_space<vmem>>, vector<1x8xf32>
      %73 = vector.broadcast %72 : vector<1x8xf32> to vector<256x8xf32>
      %74 = arith.mulf %71, %73 : vector<256x8xf32>
      %c1_41 = arith.constant 1 : index
      %c0_42 = arith.constant 0 : index
      %75 = vector.load %arg7[%c1_41, %c0_42] : memref<2x8xf32, #tpu.memory_space<vmem>>, vector<1x8xf32>
      %76 = vector.broadcast %75 : vector<1x8xf32> to vector<256x8xf32>
      %77 = arith.addf %74, %76 : vector<256x8xf32>
      %cst_43 = arith.constant 0.000000e+00 : f32
      %78 = vector.broadcast %cst_43 : f32 to vector<256x8xf32>
      %79 = arith.maximumf %77, %78 : vector<256x8xf32>
      %80 = vector.shape_cast %79 : vector<256x8xf32> to vector<16x16x8xf32>
      %c1_44 = arith.constant 1 : index
      %c1_45 = arith.constant 1 : index
      %c0_46 = arith.constant 0 : index
      %81 = vector.load %arg12[%c1_44, %c1_45, %c0_46] : memref<18x18x8xf32, #tpu.memory_space<vmem>>, vector<16x16x8xf32>
      tpu.vector_store %arg12[%c1_44, %c1_45, %c0_46], %80 {strides = array<i32>} : memref<18x18x8xf32, #tpu.memory_space<vmem>>, vector<16x16x8xf32>,
    } else {
    }
    %c8_i32 = arith.constant 8 : i32
    %3 = arith.muli %arg1, %c8_i32 : i32
    %c1_i32 = arith.constant 1 : i32
    %4 = arith.muli %3, %c1_i32 : i32
    %5 = tpu.assume_multiple %4, 8 : i32
    %6 = arith.index_cast %5 : i32 to index
    %c0 = arith.constant 0 : index
    %c0_1 = arith.constant 0 : index
    %7 = vector.load %arg12[%6, %c0, %c0_1] : memref<18x18x8xf32, #tpu.memory_space<vmem>>, vector<10x18x8xf32>
    %8 = vector.extract_strided_slice %7 {offsets = [0, 0, 0], sizes = [8, 16, 8], strides = [1, 1, 1]} : vector<10x18x8xf32> to vector<8x16x8xf32>
    %9 = vector.shape_cast %8 : vector<8x16x8xf32> to vector<128x8xf32>
    %10 = vector.extract_strided_slice %7 {offsets = [0, 1, 0], sizes = [8, 16, 8], strides = [1, 1, 1]} : vector<10x18x8xf32> to vector<8x16x8xf32>
    %11 = vector.shape_cast %10 : vector<8x16x8xf32> to vector<128x8xf32>
    %12 = vector.extract_strided_slice %7 {offsets = [0, 2, 0], sizes = [8, 16, 8], strides = [1, 1, 1]} : vector<10x18x8xf32> to vector<8x16x8xf32>
    %13 = vector.shape_cast %12 : vector<8x16x8xf32> to vector<128x8xf32>
    %14 = vector.extract_strided_slice %7 {offsets = [1, 0, 0], sizes = [8, 16, 8], strides = [1, 1, 1]} : vector<10x18x8xf32> to vector<8x16x8xf32>
    %15 = vector.shape_cast %14 : vector<8x16x8xf32> to vector<128x8xf32>
    %16 = vector.extract_strided_slice %7 {offsets = [1, 1, 0], sizes = [8, 16, 8], strides = [1, 1, 1]} : vector<10x18x8xf32> to vector<8x16x8xf32>
    %17 = vector.shape_cast %16 : vector<8x16x8xf32> to vector<128x8xf32>
    %18 = vector.extract_strided_slice %7 {offsets = [1, 2, 0], sizes = [8, 16, 8], strides = [1, 1, 1]} : vector<10x18x8xf32> to vector<8x16x8xf32>
    %19 = vector.shape_cast %18 : vector<8x16x8xf32> to vector<128x8xf32>
    %20 = vector.extract_strided_slice %7 {offsets = [2, 0, 0], sizes = [8, 16, 8], strides = [1, 1, 1]} : vector<10x18x8xf32> to vector<8x16x8xf32>
    %21 = vector.shape_cast %20 : vector<8x16x8xf32> to vector<128x8xf32>
    %22 = vector.extract_strided_slice %7 {offsets = [2, 1, 0], sizes = [8, 16, 8], strides = [1, 1, 1]} : vector<10x18x8xf32> to vector<8x16x8xf32>
    %23 = vector.shape_cast %22 : vector<8x16x8xf32> to vector<128x8xf32>
    %24 = vector.extract_strided_slice %7 {offsets = [2, 2, 0], sizes = [8, 16, 8], strides = [1, 1, 1]} : vector<10x18x8xf32> to vector<8x16x8xf32>
    %25 = vector.shape_cast %24 : vector<8x16x8xf32> to vector<128x8xf32>
    %26 = tpu.concatenate %9, %11, %13, %15, %17, %19, %21, %23, %25 in 1 : vector<128x8xf32>, vector<128x8xf32>, vector<128x8xf32>, vector<128x8xf32>, vector<128x8xf32>, vector<128x8xf32>, vector<128x8xf32>, vector<128x8xf32>, vector<128x8xf32> -> vector<128x72xf32>
    %27 = arith.truncf %26 : vector<128x72xf32> to vector<128x72xbf16>
    %c0_2 = arith.constant 0 : index
    %c0_3 = arith.constant 0 : index
    %28 = vector.load %arg4[%c0_2, %c0_3] : memref<72x8xbf16, #tpu.memory_space<vmem>>, vector<72x8xbf16>
    %cst = arith.constant dense<0.000000e+00> : vector<128x8xf32>
    %29 = tpu.matmul %27, %28, %cst {dimension_numbers = #tpu.dot_dimension_numbers<[1], [0], [0], [1], [0, 0, 1, 1], [], []>} : vector<128x72xbf16>, vector<72x8xbf16>, vector<128x8xf32> -> vector<128x8xf32>
    %c0_4 = arith.constant 0 : index
    %c0_5 = arith.constant 0 : index
    %30 = vector.load %arg8[%c0_4, %c0_5] : memref<2x8xf32, #tpu.memory_space<vmem>>, vector<1x8xf32>
    %31 = vector.broadcast %30 : vector<1x8xf32> to vector<128x8xf32>
    %32 = arith.mulf %29, %31 : vector<128x8xf32>
    %c1 = arith.constant 1 : index
    %c0_6 = arith.constant 0 : index
    %33 = vector.load %arg8[%c1, %c0_6] : memref<2x8xf32, #tpu.memory_space<vmem>>, vector<1x8xf32>
    %34 = vector.broadcast %33 : vector<1x8xf32> to vector<128x8xf32>
    %35 = arith.addf %32, %34 : vector<128x8xf32>
    %cst_7 = arith.constant 0.000000e+00 : f32
    %36 = vector.broadcast %cst_7 : f32 to vector<128x8xf32>
    %37 = arith.maximumf %35, %36 : vector<128x8xf32>
    %38 = arith.truncf %37 : vector<128x8xf32> to vector<128x8xbf16>
    %c0_8 = arith.constant 0 : index
    %c0_9 = arith.constant 0 : index
    %39 = vector.load %arg5[%c0_8, %c0_9] : memref<8x32xbf16, #tpu.memory_space<vmem>>, vector<8x32xbf16>
    %cst_10 = arith.constant dense<0.000000e+00> : vector<128x32xf32>
    %40 = tpu.matmul %38, %39, %cst_10 {dimension_numbers = #tpu.dot_dimension_numbers<[1], [0], [0], [1], [0, 0, 1, 1], [], []>} : vector<128x8xbf16>, vector<8x32xbf16>, vector<128x32xf32> -> vector<128x32xf32>
    %c0_11 = arith.constant 0 : index
    %c0_12 = arith.constant 0 : index
    %41 = vector.load %arg9[%c0_11, %c0_12] : memref<2x32xf32, #tpu.memory_space<vmem>>, vector<1x32xf32>
    %42 = vector.broadcast %41 : vector<1x32xf32> to vector<128x32xf32>
    %43 = arith.mulf %40, %42 : vector<128x32xf32>
    %c1_13 = arith.constant 1 : index
    %c0_14 = arith.constant 0 : index
    %44 = vector.load %arg9[%c1_13, %c0_14] : memref<2x32xf32, #tpu.memory_space<vmem>>, vector<1x32xf32>
    %45 = vector.broadcast %44 : vector<1x32xf32> to vector<128x32xf32>
    %46 = arith.addf %43, %45 : vector<128x32xf32>
    %c0_15 = arith.constant 0 : index
    %47 = arith.index_cast %5 : i32 to index
    %c0_16 = arith.constant 0 : index
    %c0_17 = arith.constant 0 : index
    %48 = vector.load %arg2[%c0_15, %47, %c0_16, %c0_17] : memref<1x16x16x4xf32, #tpu.memory_space<vmem>>, vector<1x8x16x4xf32>
    %49 = vector.shape_cast %48 : vector<1x8x16x4xf32> to vector<8x16x4xf32>
    %50 = vector.shape_cast %49 : vector<8x16x4xf32> to vector<128x4xf32>
    %51 = arith.truncf %50 : vector<128x4xf32> to vector<128x4xbf16>
    %c0_18 = arith.constant 0 : index
    %c0_19 = arith.constant 0 : index
    %52 = vector.load %arg6[%c0_18, %c0_19] : memref<4x32xbf16, #tpu.memory_space<vmem>>, vector<4x32xbf16>
    %cst_20 = arith.constant dense<0.000000e+00> : vector<128x32xf32>
    %53 = tpu.matmul %51, %52, %cst_20 {dimension_numbers = #tpu.dot_dimension_numbers<[1], [0], [0], [1], [0, 0, 1, 1], [], []>} : vector<128x4xbf16>, vector<4x32xbf16>, vector<128x32xf32> -> vector<128x32xf32>
    %c0_21 = arith.constant 0 : index
    %c0_22 = arith.constant 0 : index
    %54 = vector.load %arg10[%c0_21, %c0_22] : memref<2x32xf32, #tpu.memory_space<vmem>>, vector<1x32xf32>
    %55 = vector.broadcast %54 : vector<1x32xf32> to vector<128x32xf32>
    %56 = arith.mulf %53, %55 : vector<128x32xf32>
    %57 = arith.addf %46, %56 : vector<128x32xf32>
    %c1_23 = arith.constant 1 : index
    %c0_24 = arith.constant 0 : index
    %58 = vector.load %arg10[%c1_23, %c0_24] : memref<2x32xf32, #tpu.memory_space<vmem>>, vector<1x32xf32>
    %59 = vector.broadcast %58 : vector<1x32xf32> to vector<128x32xf32>
    %60 = arith.addf %57, %59 : vector<128x32xf32>
    %cst_25 = arith.constant 0.000000e+00 : f32
    %61 = vector.broadcast %cst_25 : f32 to vector<128x32xf32>
    %62 = arith.maximumf %60, %61 : vector<128x32xf32>
    %c0_26 = arith.constant 0 : index
    %c0_27 = arith.constant 0 : index
    %63 = vector.load %arg11[%c0_26, %c0_27] : memref<128x32xf32, #tpu.memory_space<vmem>>, vector<128x32xf32>
    tpu.vector_store %arg11[%c0_26, %c0_27], %62 {strides = array<i32>} : memref<128x32xf32, #tpu.memory_space<vmem>>, vector<128x32xf32>,
    return
  }
  func.func @transform_0(%arg0: i32, %arg1: i32) -> (i32, i32, i32, i32) {
    %c0_i32 = arith.constant 0 : i32
    %c0_i32_0 = arith.constant 0 : i32
    %c0_i32_1 = arith.constant 0 : i32
    %c0_i32_2 = arith.constant 0 : i32
    return %arg0, %c0_i32, %c0_i32_0, %c0_i32_1 : i32, i32, i32, i32
  }
  func.func @transform_1(%arg0: i32, %arg1: i32) -> (i32, i32) {
    %c0_i32 = arith.constant 0 : i32
    %c0_i32_0 = arith.constant 0 : i32
    %c0_i32_1 = arith.constant 0 : i32
    return %c0_i32, %c0_i32_0 : i32, i32
  }
  func.func @transform_2(%arg0: i32, %arg1: i32) -> (i32, i32) {
    %c0_i32 = arith.constant 0 : i32
    %c0_i32_0 = arith.constant 0 : i32
    %c0_i32_1 = arith.constant 0 : i32
    return %c0_i32, %c0_i32_0 : i32, i32
  }
  func.func @transform_3(%arg0: i32, %arg1: i32) -> (i32, i32) {
    %c0_i32 = arith.constant 0 : i32
    %c0_i32_0 = arith.constant 0 : i32
    %c0_i32_1 = arith.constant 0 : i32
    return %c0_i32, %c0_i32_0 : i32, i32
  }
  func.func @transform_4(%arg0: i32, %arg1: i32) -> (i32, i32) {
    %c0_i32 = arith.constant 0 : i32
    %c0_i32_0 = arith.constant 0 : i32
    %c0_i32_1 = arith.constant 0 : i32
    return %c0_i32, %c0_i32_0 : i32, i32
  }
  func.func @transform_5(%arg0: i32, %arg1: i32) -> (i32, i32) {
    %c0_i32 = arith.constant 0 : i32
    %c0_i32_0 = arith.constant 0 : i32
    %c0_i32_1 = arith.constant 0 : i32
    return %c0_i32, %c0_i32_0 : i32, i32
  }
  func.func @transform_6(%arg0: i32, %arg1: i32) -> (i32, i32) {
    %c0_i32 = arith.constant 0 : i32
    %c0_i32_0 = arith.constant 0 : i32
    %c0_i32_1 = arith.constant 0 : i32
    return %c0_i32, %c0_i32_0 : i32, i32
  }
  func.func @transform_7(%arg0: i32, %arg1: i32) -> (i32, i32) {
    %c0_i32 = arith.constant 0 : i32
    %c0_i32_0 = arith.constant 0 : i32
    %c0_i32_1 = arith.constant 0 : i32
    return %c0_i32, %c0_i32_0 : i32, i32
  }
  func.func @transform_8(%arg0: i32, %arg1: i32) -> (i32, i32) {
    %c0_i32 = arith.constant 0 : i32
    %c0_i32_0 = arith.constant 0 : i32
    %c0_i32_1 = arith.constant 0 : i32
    return %c0_i32, %c0_i32_0 : i32, i32
  }
  func.func @transform_9(%arg0: i32, %arg1: i32) -> (i32, i32) {
    %c2_i32 = arith.constant 2 : i32
    %0 = arith.muli %arg0, %c2_i32 : i32
    %1 = arith.addi %0, %arg1 : i32
    %c0_i32 = arith.constant 0 : i32
    %c0_i32_0 = arith.constant 0 : i32
    return %1, %c0_i32 : i32, i32
  }
}

</mosaic_0001>

<bundles_post_ra>
// kernel: tpu_custom_call.1
= control target key start
LH: loop header
LB: loop body
LE: loop exit
PB: predicated region body
PF: predicated region fallthrough
CT: control target
= control target key end

     0   :  { %s2554_s30 = smov 0   ;;  %s2556_s10 = smov 0   ;;  %s3562_s0 = inlined_call_operand.vmem [shape: f32[2,16,16,4], index: 0, kind: input, shape index: {}]   ;;  %s3563_s1 = inlined_call_operand.vmem [shape: bf16[4,8], index: 1, kind: input, shape index: {}]   ;;  %s3564_s2 = inlined_call_operand.vmem [shape: bf16[72,8], index: 2, kind: input, shape index: {}]   ;;  %s3565_s3 = inlined_call_operand.vmem [shape: bf16[8,32], index: 3, kind: input, shape index: {}]   ;;  %s3566_s4 = inlined_call_operand.vmem [shape: bf16[4,32], index: 4, kind: input, shape index: {}]   ;;  %s3567_s5 = inlined_call_operand.vmem [shape: f32[2,8], index: 5, kind: input, shape index: {}]   ;;  %s3568_s6 = inlined_call_operand.vmem [shape: f32[2,8], index: 6, kind: input, shape index: {}]   ;;  %s3569_s7 = inlined_call_operand.vmem [shape: f32[2,32], index: 7, kind: input, shape index: {}]   ;;  %s3570_s8 = inlined_call_operand.vmem [shape: f32[2,32], index: 8, kind: input, shape index: {}]   ;;  %s3571_s9 = inlined_call_operand.vmem [shape: f32[512,32], index: 9, kind: output, shape index: {}]  }
   0x1   :  { %s2558_s11 = smov 0   ;;  %s2560_s12 = smov 0  }
   0x2   :  { %s2562_s13 = smov 0  }
   0x3 LB: > { %s28_s14 = sadd.s32 1, %s2485_s11  ;;  %s31_s15 = sadd.s32 1, %s2489_s12  ;;  %s2493_s13 = sphi %s2562_s13, %s19_s13   ;;  %s2489_s12 = sphi %s2560_s12, %s3575_s12   ;;  %s2485_s11 = sphi %s2558_s11, %s3574_s11   ;;  %s2481_s10 = sphi %s2556_s10, %s3573_s10   ;;  %s2477_s30 = sphi %s2554_s30, %s3572_s30  }
   0x4   : > { %p29_p0 = scmp.ge.s32.totalorder %s28_s14, 2  ;;  %p1994_p1 = scmp.ge.s32.totalorder %s2493_s13, 1 }
   0x5   : > { %p303_p2 = scmp.lt.s32.totalorder %s2493_s13, 5 }
   0x6   : > { %s3577_s14 = smov (%p29_p0, %s28_s14), 0  ;;  %s3579_s15 = smov (!%p29_p0, %s31_s15), %s2489_s12 }
   0x7   : > { %p304_p3 = pnand %p1994_p1, %p303_p2  ;;  %p33_p4 = scmp.ge.s32.totalorder %s3579_s15, 2 }
   0x8   : > { %p341_p5 = scmp.lt.s32.totalorder (!%p304_p3), %s2481_s10, 1  ;;  %s1997_s16 = sshll.u32 (!%p304_p3), %s2481_s10, 1 }
   0x9   : > { %s3581_s15 = smov (%p33_p4, %s3579_s15), 0  ;;  %307 = sbr.rel (%p304_p3) target bundleno = 828 (0x33c), region = 56 }
   0xa   : > { %s347_s17 = sadd.s32 (!%p304_p3), %s2477_s30, %s1997_s16  ;;  %p2000_p7 = scmp.ne.s32.totalorder (!%p304_p3), %s2477_s30, 0 }
   0xb   : > { %s1998_s18 = sshll.u32 (!%p304_p3), %s347_s17, 4 }
   0xc   : > { %p349_p6 = scmp.lt.s32.totalorder (!%p304_p3), %s1998_s18, 63 }
   0xe   : > { %s3583_s10 = smov (!%p341_p5, %s2481_s10), 1  ;;  %s3585_s18 = smov (!%p349_p6, %s1998_s18), 63 }
   0xf   : > { %s2062_s19 = sshll.u32 %s3583_s10, 8  ;;  %s1999_s23 = sshll.u32 %s3585_s18, 3 }
  0x10   : > { %s2590_s22 = scalar_lea.vmem %s3562_s0, %s2062_s19  ;;  %s2595_s26 = scalar_lea.vmem %s3571_s9, %s1999_s23 }
  0x11   : > { %360 = sbr.rel (%p2000_p7) target bundleno = 224 (0xe0), region = 60 }
  0x16   : > { %v465_v0 = vld [vmem:[%s3563_s1] sm:$0x3]  ;;  %vm515_vm0 = vcmask 1041408   ;;  %v418_v2 = vld [vmem:[%s2590_s22 + $0x8] sm:$0xff]  ;;  %vm466_vm1 = vcmask 31744   ;;  %v419_v14 = vld [vmem:[%s2590_s22 + $0x10] sm:$0xff] }
  0x17   : > { %v417_v1 = vld [vmem:[%s2590_s22] sm:$0xff]  ;;  %v517_v3 = vsel %vm515_vm0, %v465_v0, 0  ;;  %v426_v6 = vld [vmem:[%s2590_s22 + $0x48] sm:$0xff]  ;;  %v420_v15 = vld [vmem:[%s2590_s22 + $0x18] sm:$0xff]  ;;  %vm361_vm2 = vcmask 64512   ;;  %v2495_v26 = vmov 0.0  }
  0x18   : > { %v449_v4 = vpack.c.bf16 %v418_v2, %v417_v1  ;;  %v425_v5 = vld [vmem:[%s2590_s22 + $0x40] sm:$0xff]  ;;  %526 = vmatpush.bf16.msra.mxu0 %v517_v3  ;;  %2068 = vmatpush.bf16.msra.mxu1 %v517_v3  ;;  %v434_v9 = vld [vmem:[%s2590_s22 + $0x88] sm:$0xff]  ;;  %v427_v16 = vld [vmem:[%s2590_s22 + $0x50] sm:$0xff]  ;;  %v450_v22 = vpack.c.bf16 %v420_v15, %v419_v14  ;;  %362 = vst.msk [vmem:[#allocation2] sm:$0xff] %vm361_vm2, %v2495_v26  ;;  %vm364_vm3 = vcmask 58368  }
  0x19   : > { %v433_v7 = vld [vmem:[%s2590_s22 + $0x80] sm:$0xff]  ;;  %v453_v8 = vpack.c.bf16 %v426_v6, %v425_v5  ;;  %v442_v11 = vld [vmem:[%s2590_s22 + $0xc8] sm:$0xff]  ;;  %2069 = vmatpush.bf16.msra.mxu2 %v517_v3  ;;  %2070 = vmatpush.bf16.msra.mxu3 %v517_v3  ;;  %v428_v17 = vld [vmem:[%s2590_s22 + $0x58] sm:$0xff]  ;;  %363 = vst.msk [vmem:[#allocation2 + $0x8] sm:$0xff] %vm361_vm2, %v2495_v26 }
  0x1a   : > { %v441_v10 = vld [vmem:[%s2590_s22 + $0xc0] sm:$0xff]  ;;  %v457_v12 = vpack.c.bf16 %v434_v9, %v433_v7  ;;  %v435_v18 = vld [vmem:[%s2590_s22 + $0x90] sm:$0xff]  ;;  %v436_v19 = vld [vmem:[%s2590_s22 + $0x98] sm:$0xff]  ;;  %v454_v23 = vpack.c.bf16 %v428_v17, %v427_v16  ;;  %366 = vst.msk [vmem:[#allocation2 + $0x18] sm:$0xff] %vm361_vm2, %v2495_v26 }
  0x1b   : > { %v461_v13 = vpack.c.bf16 %v442_v11, %v441_v10  ;;  %2001 = vmatmul.msk.bf16.vlgmr.msra.gmra.mxu0 %vm466_vm1, %v449_v4  ;;  %2005 = vmatmul.msk.bf16.vlgmr.msra.gmra.mxu1 %vm466_vm1, %v453_v8  ;;  %v443_v20 = vld [vmem:[%s2590_s22 + $0xd0] sm:$0xff]  ;;  %v444_v21 = vld [vmem:[%s2590_s22 + $0xd8] sm:$0xff]  ;;  %v458_v24 = vpack.c.bf16 %v436_v19, %v435_v18  ;;  %367 = vst.msk [vmem:[#allocation2 + $0x20] sm:$0xff] %vm361_vm2, %v2495_v26  ;;  %v421_v27 = vld [vmem:[%s2590_s22 + $0x20] sm:$0xff] }
  0x1c   : > { %2009 = vmatmul.msk.bf16.vlgmr.msra.gmra.mxu2 %vm466_vm1, %v457_v12  ;;  %v462_v25 = vpack.c.bf16 %v444_v21, %v443_v20  ;;  %414 = vst.msk [vmem:[#allocation2 + $0x198] sm:$0xff] %vm361_vm2, %v2495_v26  ;;  %v422_v28 = vld [vmem:[%s2590_s22 + $0x28] sm:$0xff]  ;;  %v429_v29 = vld [vmem:[%s2590_s22 + $0x60] sm:$0xff]  ;;  %v423_v39 = vld [vmem:[%s2590_s22 + $0x30] sm:$0xff] }
  0x1d   : > { %2013 = vmatmul.msk.bf16.vlgmr.msra.gmra.mxu3 %vm466_vm1, %v461_v13  ;;  %415 = vst.msk [vmem:[#allocation2 + $0x1a0] sm:$0xff] %vm361_vm2, %v2495_v26  ;;  %v430_v30 = vld [vmem:[%s2590_s22 + $0x68] sm:$0xff]  ;;  %v437_v31 = vld [vmem:[%s2590_s22 + $0xa0] sm:$0xff]  ;;  %v451_v35 = vpack.c.bf16 %v422_v28, %v421_v27  ;;  %v424_v40 = vld [vmem:[%s2590_s22 + $0x38] sm:$0xff] }
  0x1e   : > { %369 = vst.msk [vmem:[#allocation2 + $0x30] sm:$0xff] %vm361_vm2, %v2495_v26  ;;  %v438_v32 = vld [vmem:[%s2590_s22 + $0xa8] sm:$0xff]  ;;  %v445_v33 = vld [vmem:[%s2590_s22 + $0xe0] sm:$0xff]  ;;  %v455_v36 = vpack.c.bf16 %v430_v30, %v429_v29  ;;  %v431_v41 = vld [vmem:[%s2590_s22 + $0x70] sm:$0xff]  ;;  %v452_v47 = vpack.c.bf16 %v424_v40, %v423_v39 }
  0x1f   : > { %370 = vst.msk [vmem:[#allocation2 + $0x38] sm:$0xff] %vm361_vm2, %v2495_v26  ;;  %v446_v34 = vld [vmem:[%s2590_s22 + $0xe8] sm:$0xff]  ;;  %v459_v37 = vpack.c.bf16 %v438_v32, %v437_v31  ;;  %v432_v42 = vld [vmem:[%s2590_s22 + $0x78] sm:$0xff]  ;;  %v439_v43 = vld [vmem:[%s2590_s22 + $0xb0] sm:$0xff] }
  0x20   : > { %372 = vst.msk [vmem:[#allocation2 + $0x48] sm:$0xff] %vm361_vm2, %v2495_v26  ;;  %v463_v38 = vpack.c.bf16 %v446_v34, %v445_v33  ;;  %v440_v44 = vld [vmem:[%s2590_s22 + $0xb8] sm:$0xff]  ;;  %v447_v45 = vld [vmem:[%s2590_s22 + $0xf0] sm:$0xff]  ;;  %v456_v48 = vpack.c.bf16 %v432_v42, %v431_v41  ;;  %v2750_v51 = vld [vmem:[%s3567_s5] ss:$0 sm:$0xff] }
  0x21   : > { %373 = vst.msk [vmem:[#allocation2 + $0x50] sm:$0xff] %vm361_vm2, %v2495_v26  ;;  %v448_v46 = vld [vmem:[%s2590_s22 + $0xf8] sm:$0xff]  ;;  %v460_v49 = vpack.c.bf16 %v440_v44, %v439_v43  ;;  %v2759_v52 = vld [vmem:[%s3567_s5 + $0x1] ss:$0 sm:$0xff] }
  0x22   : > { %375 = vst.msk [vmem:[#allocation2 + $0x60] sm:$0xff] %vm361_vm2, %v2495_v26  ;;  %v464_v50 = vpack.c.bf16 %v448_v46, %v447_v45 }
  0x23   : > { %376 = vst.msk [vmem:[#allocation2 + $0x68] sm:$0xff] %vm361_vm2, %v2495_v26 }
  0x24   : > { %378 = vst.msk [vmem:[#allocation2 + $0x78] sm:$0xff] %vm361_vm2, %v2495_v26 }
  0x25   : > { %379 = vst.msk [vmem:[#allocation2 + $0x80] sm:$0xff] %vm361_vm2, %v2495_v26 }
  0x26   : > { %381 = vst.msk [vmem:[#allocation2 + $0x90] sm:$0xff] %vm361_vm2, %v2495_v26 }
  0x27   : > { %382 = vst.msk [vmem:[#allocation2 + $0x98] sm:$0xff] %vm361_vm2, %v2495_v26 }
  0x28   : > { %384 = vst.msk [vmem:[#allocation2 + $0xa8] sm:$0xff] %vm361_vm2, %v2495_v26 }
  0x29   : > { %385 = vst.msk [vmem:[#allocation2 + $0xb0] sm:$0xff] %vm361_vm2, %v2495_v26 }
  0x2a   : > { %387 = vst.msk [vmem:[#allocation2 + $0xc0] sm:$0xff] %vm361_vm2, %v2495_v26 }
  0x2b   : > { %2002 = vmatmul.msk.bf16.gmra.mxu0 %vm466_vm1, %v450_v22  ;;  %2006 = vmatmul.msk.bf16.gmra.mxu1 %vm466_vm1, %v454_v23  ;;  %388 = vst.msk [vmem:[#allocation2 + $0xc8] sm:$0xff] %vm361_vm2, %v2495_v26 }
  0x2c   : > { %2010 = vmatmul.msk.bf16.gmra.mxu2 %vm466_vm1, %v458_v24  ;;  %390 = vst.msk [vmem:[#allocation2 + $0xd8] sm:$0xff] %vm361_vm2, %v2495_v26 }
  0x2d   : > { %2014 = vmatmul.msk.bf16.gmra.mxu3 %vm466_vm1, %v462_v25  ;;  %391 = vst.msk [vmem:[#allocation2 + $0xe0] sm:$0xff] %vm361_vm2, %v2495_v26 }
  0x2e   : > { %393 = vst.msk [vmem:[#allocation2 + $0xf0] sm:$0xff] %vm361_vm2, %v2495_v26 }
  0x2f   : > { %394 = vst.msk [vmem:[#allocation2 + $0xf8] sm:$0xff] %vm361_vm2, %v2495_v26 }
  0x30   : > { %396 = vst.msk [vmem:[#allocation2 + $0x108] sm:$0xff] %vm361_vm2, %v2495_v26 }
  0x31   : > { %397 = vst.msk [vmem:[#allocation2 + $0x110] sm:$0xff] %vm361_vm2, %v2495_v26 }
  0x32   : > { %399 = vst.msk [vmem:[#allocation2 + $0x120] sm:$0xff] %vm361_vm2, %v2495_v26 }
  0x33   : > { %400 = vst.msk [vmem:[#allocation2 + $0x128] sm:$0xff] %vm361_vm2, %v2495_v26 }
  0x34   : > { %402 = vst.msk [vmem:[#allocation2 + $0x138] sm:$0xff] %vm361_vm2, %v2495_v26 }
  0x35   : > { %403 = vst.msk [vmem:[#allocation2 + $0x140] sm:$0xff] %vm361_vm2, %v2495_v26 }
  0x36   : > { %405 = vst.msk [vmem:[#allocation2 + $0x150] sm:$0xff] %vm361_vm2, %v2495_v26 }
  0x37   : > { %406 = vst.msk [vmem:[#allocation2 + $0x158] sm:$0xff] %vm361_vm2, %v2495_v26 }
  0x38   : > { %408 = vst.msk [vmem:[#allocation2 + $0x168] sm:$0xff] %vm361_vm2, %v2495_v26 }
  0x39   : > { %409 = vst.msk [vmem:[#allocation2 + $0x170] sm:$0xff] %vm361_vm2, %v2495_v26 }
  0x3a   : > { %411 = vst.msk [vmem:[#allocation2 + $0x180] sm:$0xff] %vm361_vm2, %v2495_v26 }
  0x3b   : > { %2003 = vmatmul.msk.bf16.gmra.mxu0 %vm466_vm1, %v451_v35  ;;  %2007 = vmatmul.msk.bf16.gmra.mxu1 %vm466_vm1, %v455_v36  ;;  %412 = vst.msk [vmem:[#allocation2 + $0x188] sm:$0xff] %vm361_vm2, %v2495_v26 }
  0x3c   : > { %2011 = vmatmul.msk.bf16.gmra.mxu2 %vm466_vm1, %v459_v37  ;;  %365 = vst.msk [vmem:[#allocation2 + $0x10] sm:$0x3] %vm364_vm3, %v2495_v26 }
  0x3d   : > { %2015 = vmatmul.msk.bf16.gmra.mxu3 %vm466_vm1, %v463_v38  ;;  %368 = vst.msk [vmem:[#allocation2 + $0x28] sm:$0x3] %vm364_vm3, %v2495_v26 }
  0x3e   : > { %416 = vst.msk [vmem:[#allocation2 + $0x1a8] sm:$0x3] %vm364_vm3, %v2495_v26 }
  0x3f   : > { %371 = vst.msk [vmem:[#allocation2 + $0x40] sm:$0x3] %vm364_vm3, %v2495_v26 }
  0x40   : > { %374 = vst.msk [vmem:[#allocation2 + $0x58] sm:$0x3] %vm364_vm3, %v2495_v26 }
  0x41   : > { %377 = vst.msk [vmem:[#allocation2 + $0x70] sm:$0x3] %vm364_vm3, %v2495_v26 }
  0x42   : > { %380 = vst.msk [vmem:[#allocation2 + $0x88] sm:$0x3] %vm364_vm3, %v2495_v26 }
  0x43   : > { %383 = vst.msk [vmem:[#allocation2 + $0xa0] sm:$0x3] %vm364_vm3, %v2495_v26 }
  0x44   : > { %386 = vst.msk [vmem:[#allocation2 + $0xb8] sm:$0x3] %vm364_vm3, %v2495_v26 }
  0x45   : > { %389 = vst.msk [vmem:[#allocation2 + $0xd0] sm:$0x3] %vm364_vm3, %v2495_v26 }
  0x46   : > { %392 = vst.msk [vmem:[#allocation2 + $0xe8] sm:$0x3] %vm364_vm3, %v2495_v26 }
  0x47   : > { %395 = vst.msk [vmem:[#allocation2 + $0x100] sm:$0x3] %vm364_vm3, %v2495_v26 }
  0x48   : > { %398 = vst.msk [vmem:[#allocation2 + $0x118] sm:$0x3] %vm364_vm3, %v2495_v26 }
  0x49   : > { %401 = vst.msk [vmem:[#allocation2 + $0x130] sm:$0x3] %vm364_vm3, %v2495_v26 }
  0x4a   : > { %404 = vst.msk [vmem:[#allocation2 + $0x148] sm:$0x3] %vm364_vm3, %v2495_v26 }
  0x4b   : > { %2004 = vmatmul.msk.bf16.gmra.mxu0 %vm466_vm1, %v452_v47  ;;  %2008 = vmatmul.msk.bf16.gmra.mxu1 %vm466_vm1, %v456_v48  ;;  %407 = vst.msk [vmem:[#allocation2 + $0x160] sm:$0x3] %vm364_vm3, %v2495_v26 }
  0x4c   : > { %2012 = vmatmul.msk.bf16.gmra.mxu2 %vm466_vm1, %v460_v49  ;;  %410 = vst.msk [vmem:[#allocation2 + $0x178] sm:$0x3] %vm364_vm3, %v2495_v26 }
  0x4d   : > { %2016 = vmatmul.msk.bf16.gmra.mxu3 %vm466_vm1, %v464_v50  ;;  %413 = vst.msk [vmem:[#allocation2 + $0x190] sm:$0x3] %vm364_vm3, %v2495_v26 }
  0x98   : > { %v528_v53 = vpop.f32.mrf.mxu0  ;;  %v548_v54 = vpop.f32.mrf.mxu1 }
  0x99   : > { %v610_v55 = vmul.f32 %v2750_v51, %v528_v53  ;;  %v618_v56 = vmul.f32 %v2750_v51, %v548_v54 }
  0x9b   : > { %v644_v57 = vadd.f32 %v2759_v52, %v610_v55  ;;  %v652_v58 = vadd.f32 %v2759_v52, %v618_v56 }
  0x9d   : > { %v676_v59 = vmax.f32 %v644_v57, 0.0  ;;  %v684_v60 = vmax.f32 %v652_v58, 0.0 }
  0x9f   : > { %709 = vst.msk [vmem:[#allocation2 + $0x19] sm:$0xff] %vm361_vm2, %v676_v59  ;;  %v568_v61 = vpop.f32.mrf.mxu2 }
  0xa0   : > { %v588_v62 = vpop.f32.mrf.mxu3  ;;  %717 = vst.msk [vmem:[#allocation2 + $0x79] sm:$0xff] %vm361_vm2, %v684_v60  ;;  %v626_v63 = vmul.f32 %v2750_v51, %v568_v61  ;;  %v530_v1 = vpop.f32.mrf.mxu0 }
  0xa1   : > { %v634_v0 = vmul.f32 %v2750_v51, %v588_v62  ;;  %v550_v2 = vpop.f32.mrf.mxu1  ;;  %v611_v3 = vmul.f32 %v2750_v51, %v530_v1 }
  0xa2   : > { %v619_v4 = vmul.f32 %v2750_v51, %v550_v2  ;;  %v660_v5 = vadd.f32 %v2759_v52, %v626_v63 }
  0xa3   : > { %v668_v6 = vadd.f32 %v2759_v52, %v634_v0  ;;  %v645_v7 = vadd.f32 %v2759_v52, %v611_v3 }
  0xa4   : > { %v653_v8 = vadd.f32 %v2759_v52, %v619_v4  ;;  %v692_v9 = vmax.f32 %v660_v5, 0.0 }
  0xa5   : > { %v700_v10 = vmax.f32 %v668_v6, 0.0  ;;  %v677_v11 = vmax.f32 %v645_v7, 0.0 }
  0xa6   : > { %v685_v12 = vmax.f32 %v653_v8, 0.0  ;;  %725 = vst.msk [vmem:[#allocation2 + $0xd9] sm:$0xff] %vm361_vm2, %v692_v9 }
  0xa7   : > { %733 = vst.msk [vmem:[#allocation2 + $0x139] sm:$0xff] %vm361_vm2, %v700_v10  ;;  %v570_v13 = vpop.f32.mrf.mxu2 }
  0xa8   : > { %v590_v14 = vpop.f32.mrf.mxu3  ;;  %710 = vst.msk [vmem:[#allocation2 + $0x21] sm:$0xff] %vm361_vm2, %v677_v11  ;;  %v627_v15 = vmul.f32 %v2750_v51, %v570_v13  ;;  %v533_v17 = vpop.f32.mrf.mxu0 }
  0xa9   : > { %v635_v16 = vmul.f32 %v2750_v51, %v590_v14  ;;  %v553_v18 = vpop.f32.mrf.mxu1  ;;  %718 = vst.msk [vmem:[#allocation2 + $0x81] sm:$0xff] %vm361_vm2, %v685_v12  ;;  %v612_v19 = vmul.f32 %v2750_v51, %v533_v17 }
  0xaa   : > { %v620_v20 = vmul.f32 %v2750_v51, %v553_v18  ;;  %v661_v21 = vadd.f32 %v2759_v52, %v627_v15 }
  0xab   : > { %v669_v22 = vadd.f32 %v2759_v52, %v635_v16  ;;  %v646_v23 = vadd.f32 %v2759_v52, %v612_v19 }
  0xac   : > { %v654_v24 = vadd.f32 %v2759_v52, %v620_v20  ;;  %v693_v25 = vmax.f32 %v661_v21, 0.0 }
  0xad   : > { %v701_v26 = vmax.f32 %v669_v22, 0.0  ;;  %v678_v27 = vmax.f32 %v646_v23, 0.0 }
  0xae   : > { %v686_v28 = vmax.f32 %v654_v24, 0.0  ;;  %726 = vst.msk [vmem:[#allocation2 + $0xe1] sm:$0xff] %vm361_vm2, %v693_v25 }
  0xaf   : > { %734 = vst.msk [vmem:[#allocation2 + $0x141] sm:$0xff] %vm361_vm2, %v701_v26  ;;  %v573_v29 = vpop.f32.mrf.mxu2 }
  0xb0   : > { %v593_v30 = vpop.f32.mrf.mxu3  ;;  %711 = vst.msk [vmem:[#allocation2 + $0x31] sm:$0xff] %vm361_vm2, %v678_v27  ;;  %v628_v31 = vmul.f32 %v2750_v51, %v573_v29  ;;  %v535_v33 = vpop.f32.mrf.mxu0 }
  0xb1   : > { %v636_v32 = vmul.f32 %v2750_v51, %v593_v30  ;;  %v555_v34 = vpop.f32.mrf.mxu1  ;;  %719 = vst.msk [vmem:[#allocation2 + $0x91] sm:$0xff] %vm361_vm2, %v686_v28  ;;  %v613_v35 = vmul.f32 %v2750_v51, %v535_v33 }
  0xb2   : > { %v621_v36 = vmul.f32 %v2750_v51, %v555_v34  ;;  %v662_v37 = vadd.f32 %v2759_v52, %v628_v31 }
  0xb3   : > { %v670_v38 = vadd.f32 %v2759_v52, %v636_v32  ;;  %v647_v39 = vadd.f32 %v2759_v52, %v613_v35 }
  0xb4   : > { %v655_v40 = vadd.f32 %v2759_v52, %v621_v36  ;;  %v694_v41 = vmax.f32 %v662_v37, 0.0 }
  0xb5   : > { %v702_v42 = vmax.f32 %v670_v38, 0.0  ;;  %v679_v43 = vmax.f32 %v647_v39, 0.0 }
  0xb6   : > { %v687_v44 = vmax.f32 %v655_v40, 0.0  ;;  %727 = vst.msk [vmem:[#allocation2 + $0xf1] sm:$0xff] %vm361_vm2, %v694_v41 }
  0xb7   : > { %735 = vst.msk [vmem:[#allocation2 + $0x151] sm:$0xff] %vm361_vm2, %v702_v42  ;;  %v575_v45 = vpop.f32.mrf.mxu2 }
  0xb8   : > { %v595_v46 = vpop.f32.mrf.mxu3  ;;  %712 = vst.msk [vmem:[#allocation2 + $0x39] sm:$0xff] %vm361_vm2, %v679_v43  ;;  %v629_v47 = vmul.f32 %v2750_v51, %v575_v45  ;;  %v538_v49 = vpop.f32.mrf.mxu0 }
  0xb9   : > { %v637_v48 = vmul.f32 %v2750_v51, %v595_v46  ;;  %v558_v50 = vpop.f32.mrf.mxu1  ;;  %720 = vst.msk [vmem:[#allocation2 + $0x99] sm:$0xff] %vm361_vm2, %v687_v44  ;;  %v614_v53 = vmul.f32 %v2750_v51, %v538_v49 }
  0xba   : > { %v622_v54 = vmul.f32 %v2750_v51, %v558_v50  ;;  %v663_v55 = vadd.f32 %v2759_v52, %v629_v47 }
  0xbb   : > { %v671_v56 = vadd.f32 %v2759_v52, %v637_v48  ;;  %v648_v57 = vadd.f32 %v2759_v52, %v614_v53 }
  0xbc   : > { %v656_v58 = vadd.f32 %v2759_v52, %v622_v54  ;;  %v695_v59 = vmax.f32 %v663_v55, 0.0 }
  0xbd   : > { %v703_v60 = vmax.f32 %v671_v56, 0.0  ;;  %v680_v61 = vmax.f32 %v648_v57, 0.0 }
  0xbe   : > { %v688_v62 = vmax.f32 %v656_v58, 0.0  ;;  %728 = vst.msk [vmem:[#allocation2 + $0xf9] sm:$0xff] %vm361_vm2, %v695_v59 }
  0xbf   : > { %736 = vst.msk [vmem:[#allocation2 + $0x159] sm:$0xff] %vm361_vm2, %v703_v60  ;;  %v578_v63 = vpop.f32.mrf.mxu2 }
  0xc0   : > { %v598_v0 = vpop.f32.mrf.mxu3  ;;  %713 = vst.msk [vmem:[#allocation2 + $0x49] sm:$0xff] %vm361_vm2, %v680_v61  ;;  %v630_v1 = vmul.f32 %v2750_v51, %v578_v63  ;;  %v540_v3 = vpop.f32.mrf.mxu0 }
  0xc1   : > { %v638_v2 = vmul.f32 %v2750_v51, %v598_v0  ;;  %v560_v4 = vpop.f32.mrf.mxu1  ;;  %721 = vst.msk [vmem:[#allocation2 + $0xa9] sm:$0xff] %vm361_vm2, %v688_v62  ;;  %v615_v5 = vmul.f32 %v2750_v51, %v540_v3 }
  0xc2   : > { %v623_v6 = vmul.f32 %v2750_v51, %v560_v4  ;;  %v664_v7 = vadd.f32 %v2759_v52, %v630_v1 }
  0xc3   : > { %v672_v8 = vadd.f32 %v2759_v52, %v638_v2  ;;  %v649_v9 = vadd.f32 %v2759_v52, %v615_v5 }
  0xc4   : > { %v657_v10 = vadd.f32 %v2759_v52, %v623_v6  ;;  %v696_v11 = vmax.f32 %v664_v7, 0.0 }
  0xc5   : > { %v704_v12 = vmax.f32 %v672_v8, 0.0  ;;  %v681_v13 = vmax.f32 %v649_v9, 0.0 }
  0xc6   : > { %v689_v14 = vmax.f32 %v657_v10, 0.0  ;;  %729 = vst.msk [vmem:[#allocation2 + $0x109] sm:$0xff] %vm361_vm2, %v696_v11 }
  0xc7   : > { %737 = vst.msk [vmem:[#allocation2 + $0x169] sm:$0xff] %vm361_vm2, %v704_v12  ;;  %v580_v15 = vpop.f32.mrf.mxu2 }
  0xc8   : > { %v600_v16 = vpop.f32.mrf.mxu3  ;;  %714 = vst.msk [vmem:[#allocation2 + $0x51] sm:$0xff] %vm361_vm2, %v681_v13  ;;  %v631_v17 = vmul.f32 %v2750_v51, %v580_v15  ;;  %v543_v19 = vpop.f32.mrf.mxu0 }
  0xc9   : > { %v639_v18 = vmul.f32 %v2750_v51, %v600_v16  ;;  %v563_v20 = vpop.f32.mrf.mxu1  ;;  %722 = vst.msk [vmem:[#allocation2 + $0xb1] sm:$0xff] %vm361_vm2, %v689_v14  ;;  %v616_v21 = vmul.f32 %v2750_v51, %v543_v19 }
  0xca   : > { %v624_v22 = vmul.f32 %v2750_v51, %v563_v20  ;;  %v665_v23 = vadd.f32 %v2759_v52, %v631_v17 }
  0xcb   : > { %v673_v24 = vadd.f32 %v2759_v52, %v639_v18  ;;  %v650_v25 = vadd.f32 %v2759_v52, %v616_v21 }
  0xcc   : > { %v658_v26 = vadd.f32 %v2759_v52, %v624_v22  ;;  %v697_v27 = vmax.f32 %v665_v23, 0.0 }
  0xcd   : > { %v705_v28 = vmax.f32 %v673_v24, 0.0  ;;  %v682_v29 = vmax.f32 %v650_v25, 0.0 }
  0xce   : > { %v690_v30 = vmax.f32 %v658_v26, 0.0  ;;  %730 = vst.msk [vmem:[#allocation2 + $0x111] sm:$0xff] %vm361_vm2, %v697_v27 }
  0xcf   : > { %738 = vst.msk [vmem:[#allocation2 + $0x171] sm:$0xff] %vm361_vm2, %v705_v28  ;;  %v583_v31 = vpop.f32.mrf.mxu2 }
  0xd0   : > { %v603_v32 = vpop.f32.mrf.mxu3  ;;  %715 = vst.msk [vmem:[#allocation2 + $0x61] sm:$0xff] %vm361_vm2, %v682_v29  ;;  %v632_v33 = vmul.f32 %v2750_v51, %v583_v31  ;;  %v545_v35 = vpop.f32.mrf.mxu0 }
  0xd1   : > { %v640_v34 = vmul.f32 %v2750_v51, %v603_v32  ;;  %v565_v36 = vpop.f32.mrf.mxu1  ;;  %723 = vst.msk [vmem:[#allocation2 + $0xc1] sm:$0xff] %vm361_vm2, %v690_v30  ;;  %v617_v37 = vmul.f32 %v2750_v51, %v545_v35 }
  0xd2   : > { %v625_v38 = vmul.f32 %v2750_v51, %v565_v36  ;;  %v666_v39 = vadd.f32 %v2759_v52, %v632_v33 }
  0xd3   : > { %v674_v40 = vadd.f32 %v2759_v52, %v640_v34  ;;  %v651_v41 = vadd.f32 %v2759_v52, %v617_v37 }
  0xd4   : > { %v659_v42 = vadd.f32 %v2759_v52, %v625_v38  ;;  %v698_v43 = vmax.f32 %v666_v39, 0.0 }
  0xd5   : > { %v706_v44 = vmax.f32 %v674_v40, 0.0  ;;  %v683_v45 = vmax.f32 %v651_v41, 0.0 }
  0xd6   : > { %v691_v46 = vmax.f32 %v659_v42, 0.0  ;;  %731 = vst.msk [vmem:[#allocation2 + $0x121] sm:$0xff] %vm361_vm2, %v698_v43 }
  0xd7   : > { %739 = vst.msk [vmem:[#allocation2 + $0x181] sm:$0xff] %vm361_vm2, %v706_v44  ;;  %v585_v47 = vpop.f32.mrf.mxu2 }
  0xd8   : > { %v605_v48 = vpop.f32.mrf.mxu3  ;;  %716 = vst.msk [vmem:[#allocation2 + $0x69] sm:$0xff] %vm361_vm2, %v683_v45  ;;  %v633_v49 = vmul.f32 %v2750_v51, %v585_v47 }
  0xd9   : > { %v641_v50 = vmul.f32 %v2750_v51, %v605_v48  ;;  %724 = vst.msk [vmem:[#allocation2 + $0xc9] sm:$0xff] %vm361_vm2, %v691_v46 }
  0xda   : > { %v667_v53 = vadd.f32 %v2759_v52, %v633_v49 }
  0xdb   : > { %v675_v54 = vadd.f32 %v2759_v52, %v641_v50 }
  0xdc   : > { %v699_v55 = vmax.f32 %v667_v53, 0.0 }
  0xdd   : > { %v707_v56 = vmax.f32 %v675_v54, 0.0 }
  0xde   : > { %732 = vst.msk [vmem:[#allocation2 + $0x129] sm:$0xff] %vm361_vm2, %v699_v55 }
  0xdf   : > { %740 = vst.msk [vmem:[#allocation2 + $0x189] sm:$0xff] %vm361_vm2, %v707_v56 }
  0xe0 PF: > { %s2018_s18 = smul.u32 192, %s2477_s30  ;;  %vm798_vm4 = vcmask 1046528   ;;  %s2496_s20 = smov 24   ;;  %vm839_vm5 = vcmask 1045504   ;;  %vm1495_vm6 = vcmask 1043456   ;;  %vm1290_vm7 = vcmask 64512  }
  0xe1   : > { %s2497_s21 = smov 8   ;;  %s2498_s23 = smov 32   ;;  %vm1307_vm8 = vcmask 130048   ;;  %vm1324_vm9 = vcmask 195584   ;;  %vm1341_vm10 = vcmask 261120   ;;  %vm1358_vm11 = vcmask 326656  }
  0xe2   : > { %s2864_s19 = scalar_lea.vmem [#allocation2], %s2018_s18  ;;  %s2499_s24 = smov 40   ;;  %vm1375_vm12 = vcmask 392192   ;;  %vm1392_vm13 = vcmask 457728   ;;  %vm1409_vm14 = vcmask 523264   ;;  %vm1470_vm15 = vcmask 588800  }
  0xe3   : > { %s2500_s25 = smov 16   ;;  %s2501_s27 = smov 64   ;;  %vm1773_vm0 = vcmask 1041408   ;;  %vm1748_vm1 = vcmask 31744  }
  0xe4   : > { %s2502_s28 = smov 48   ;;  %s2503_s29 = smov 56  }
  0xe6   : > { %v2867_v51 = vld [vmem:[%s2864_s19 + $0x18] sm:$0xff]  ;;  %v2870_v52 = vld [vmem:[%s2864_s19 + $0x20] sm:$0xff]  ;;  %v2878_v59 = vld [vmem:[%s2864_s19 + $0x8] sm:$0xff] }
  0xe7   : > { %v2873_v57 = vld [vmem:[%s2864_s19] sm:$0xff]  ;;  %v2139_v58 = vpack.i.bf16 %v2870_v52, %v2867_v51  ;;  %v746_v60 = vld [vmem:[%s2864_s19 + $0x10] sm:$0x3]  ;;  %v749_v62 = vld [vmem:[%s2864_s19 + $0x28] sm:$0x3]  ;;  %v800_v63 = vrot.slane %v2878_v59, 1 }
  0xe8   : > { %v799_v61 = vrot.slane %v2873_v57, 1  ;;  %v802_v0 = vrot.slane %v746_v60, 1  ;;  %v804_v1 = vrot.slane %v2867_v51, 1  ;;  %v805_v2 = vrot.slane %v2870_v52, 1  ;;  %v2892_v9 = vld [vmem:[%s2864_s19 + $0x30] sm:$0xff]  ;;  %v2895_v10 = vld [vmem:[%s2864_s19 + $0x38] sm:$0xff] }
  0xe9   : > { %2140 = vrot.lane.b32.xlu1 %v2139_v58, %s2496_s20  ;;  %v807_v3 = vrot.slane %v749_v62, 1  ;;  %v840_v4 = vrot.slane %v2873_v57, 2  ;;  %v841_v5 = vrot.slane %v2878_v59, 2  ;;  %v843_v8 = vrot.slane %v746_v60, 2  ;;  %v752_v14 = vld [vmem:[%s2864_s19 + $0x40] sm:$0x3] }
  0xea   : > { %v801_v6 = vsel %vm798_vm4, %v799_v61, %v800_v63  ;;  %v803_v7 = vsel %vm798_vm4, %v800_v63, %v802_v0  ;;  %v806_v12 = vsel %vm798_vm4, %v804_v1, %v805_v2  ;;  %v850_v17 = vrot.slane %v2892_v9, 2  ;;  %v2925_v38 = vld [vmem:[%s2864_s19 + $0x48] sm:$0xff]  ;;  %v2928_v39 = vld [vmem:[%s2864_s19 + $0x50] sm:$0xff]  ;;  %v755_v41 = vld [vmem:[%s2864_s19 + $0x58] sm:$0x3] }
  0xeb   : > { %v2129_v11 = vpack.i.bf16 %v803_v7, %v801_v6  ;;  %v808_v13 = vsel %vm798_vm4, %v805_v2, %v807_v3  ;;  %v842_v16 = vsel %vm839_vm5, %v840_v4, %v841_v5  ;;  %v851_v18 = vrot.slane %v2895_v10, 2  ;;  %v2948_v56 = vld [vmem:[%s2864_s19 + $0x60] sm:$0xff]  ;;  %v2951_v58 = vld [vmem:[%s2864_s19 + $0x68] sm:$0xff]  ;;  %v758_v60 = vld [vmem:[%s2864_s19 + $0x70] sm:$0x3] }
  0xec   : > { %v2144_v15 = vpack.i.bf16 %v808_v13, %v806_v12  ;;  %v844_v19 = vsel %vm839_vm5, %v841_v5, %v843_v8  ;;  %v853_v20 = vrot.slane %v752_v14, 2  ;;  %v845_v21 = vrot.slane %v2867_v51, 2  ;;  %v2979_v12 = vld [vmem:[%s2864_s19 + $0x78] sm:$0xff]  ;;  %v2982_v13 = vld [vmem:[%s2864_s19 + $0x80] sm:$0xff] }
  0xed   : > { %2130 = vrot.lane.b32.xlu0 %v2129_v11, %s2497_s21  ;;  %v846_v22 = vrot.slane %v2870_v52, 2  ;;  %v848_v23 = vrot.slane %v749_v62, 2  ;;  %v2134_v25 = vpack.i.bf16 %v844_v19, %v842_v16  ;;  %v852_v26 = vsel %vm839_vm5, %v850_v17, %v851_v18  ;;  %v2994_v19 = vld [vmem:[%s2864_s19 + $0x98] sm:$0xff] }
  0xee   : > { %v809_v27 = vrot.slane %v2892_v9, 1  ;;  %v854_v29 = vsel %vm839_vm5, %v851_v18, %v853_v20  ;;  %v810_v30 = vrot.slane %v2895_v10, 1  ;;  %v812_v31 = vrot.slane %v752_v14, 1  ;;  %v761_v14 = vld [vmem:[%s2864_s19 + $0x88] sm:$0x3]  ;;  %v2991_v18 = vld [vmem:[%s2864_s19 + $0x90] sm:$0xff] }
  0xef   : > { %v847_v24 = vsel %vm839_vm5, %v845_v21, %v846_v22  ;;  %v849_v28 = vsel %vm839_vm5, %v846_v22, %v848_v23  ;;  %v2164_v33 = vpack.i.bf16 %v854_v29, %v852_v26  ;;  %v2154_v36 = vpack.i.bf16 %v2895_v10, %v2892_v9  ;;  %v764_v20 = vld [vmem:[%s2864_s19 + $0xa0] sm:$0x3] }
  0xf0   : > { %v2149_v32 = vpack.i.bf16 %v849_v28, %v847_v24  ;;  %v811_v34 = vsel %vm798_vm4, %v809_v27, %v810_v30  ;;  %v813_v35 = vsel %vm798_vm4, %v810_v30, %v812_v31  ;;  %v2194_v40 = vpack.i.bf16 %v2928_v39, %v2925_v38 }
  0xf1   : > { %2145 = vrot.lane.b32.xlu1 %v2144_v15, %s2498_s23  ;;  %v2159_v37 = vpack.i.bf16 %v813_v35, %v811_v34  ;;  %v855_v42 = vrot.slane %v2925_v38, 2  ;;  %v856_v43 = vrot.slane %v2928_v39, 2  ;;  %v858_v44 = vrot.slane %v755_v41, 2  ;;  %v3024_v34 = vld [vmem:[%s2864_s19 + $0xb0] sm:$0xff] }
  0xf2   : > { %2150 = vrot.lane.b32.xlu2 %v2149_v32, %s2499_s24  ;;  %v814_v45 = vrot.slane %v2925_v38, 1  ;;  %v815_v46 = vrot.slane %v2928_v39, 1  ;;  %v817_v47 = vrot.slane %v755_v41, 1  ;;  %v819_v61 = vrot.slane %v2948_v56, 1 }
  0xf3   : > { %v857_v48 = vsel %vm839_vm5, %v855_v42, %v856_v43  ;;  %v859_v49 = vsel %vm839_vm5, %v856_v43, %v858_v44  ;;  %v820_v62 = vrot.slane %v2951_v58, 1  ;;  %v822_v63 = vrot.slane %v758_v60, 1 }
  0xf4   : > { %v816_v50 = vsel %vm798_vm4, %v814_v45, %v815_v46  ;;  %v818_v53 = vsel %vm798_vm4, %v815_v46, %v817_v47  ;;  %v2204_v55 = vpack.i.bf16 %v859_v49, %v857_v48  ;;  %v2234_v3 = vpack.i.bf16 %v2951_v58, %v2948_v56  ;;  %v1442_v46 = vld [vmem:[%s3564_s2 + $0x20] sm:$0xf]  ;;  %v767_v48 = vld [vmem:[%s2864_s19 + $0xb8] sm:$0x3] }
  0xf5   : > { %2135 = vrot.lane.b32.xlu0 %v2134_v25, %s2500_s25  ;;  %v2199_v54 = vpack.i.bf16 %v818_v53, %v816_v50  ;;  %v821_v0 = vsel %vm798_vm4, %v819_v61, %v820_v62  ;;  %v823_v1 = vsel %vm798_vm4, %v820_v62, %v822_v63  ;;  %v860_v4 = vrot.slane %v2948_v56, 2  ;;  %v768_v61 = vld [vmem:[%s2864_s19 + $0xc0] sm:$0xff]  ;;  %v769_v62 = vld [vmem:[%s2864_s19 + $0xc8] sm:$0xff] }
  0xf6   : > { %v2963_v2 = vpack.i.bf16 %v823_v1, %v821_v0  ;;  %v861_v5 = vrot.slane %v2951_v58, 2  ;;  %v863_v6 = vrot.slane %v758_v60, 2  ;;  %v825_v16 = vrot.slane %v2982_v13, 1 }
  0xf7   : > { %v827_v17 = vrot.slane %v761_v14, 1  ;;  %v829_v21 = vrot.slane %v2991_v18, 1  ;;  %v830_v22 = vrot.slane %v2994_v19, 1  ;;  %v832_v23 = vrot.slane %v764_v20, 1 }
  0xf8   : > { %v862_v7 = vsel %vm839_vm5, %v860_v4, %v861_v5  ;;  %v864_v8 = vsel %vm839_vm5, %v861_v5, %v863_v6  ;;  %v865_v30 = vrot.slane %v2979_v12, 2  ;;  %v866_v31 = vrot.slane %v2982_v13, 2 }
  0xf9   : > { %2165 = vrot.lane.b32.xlu1 %v2164_v33, %s2501_s27  ;;  %v2975_v11 = vpack.i.bf16 %v864_v8, %v862_v7  ;;  %v828_v25 = vsel %vm798_vm4, %v825_v16, %v827_v17  ;;  %v831_v27 = vsel %vm798_vm4, %v829_v21, %v830_v22  ;;  %v833_v28 = vsel %vm798_vm4, %v830_v22, %v832_v23  ;;  %v2066_v7 = vld [vmem:[%s3564_s2 + $0x18] sm:$0xff]  ;;  %v2065_v23 = vld [vmem:[%s3564_s2 + $0x10] sm:$0xff] }
  0xfa   : > { %2155 = vrot.lane.b32.xlu2 %v2154_v36, %s2502_s28  ;;  %v3010_v29 = vpack.i.bf16 %v833_v28, %v831_v27  ;;  %v868_v35 = vrot.slane %v761_v14, 2  ;;  %v867_v42 = vsel %vm839_vm5, %v865_v30, %v866_v31  ;;  %v1460_v47 = vunpack.c.l.b16 %v1442_v46 }
  0xfb   : > { %v837_v60 = vrot.slane %v767_v48, 1  ;;  %v876_v0 = vrot.slane %v3024_v34, 2  ;;  %v878_v1 = vrot.slane %v767_v48, 2  ;;  %v3061_v4 = vpack.i.bf16 %v769_v62, %v768_v61 }
  0xfc   : > { %v869_v43 = vsel %vm839_vm5, %v866_v31, %v868_v35  ;;  %v1465_v53 = vpack.c.b16 %v1460_v47, %v1460_v47  ;;  %v884_v21 = vrot.slane %v769_v62, 1  ;;  %v2064_v31 = vld [vmem:[%s3564_s2 + $0x8] sm:$0xff]  ;;  %v3120_v47 = vpack.i.bf16 %v2994_v19, %v2991_v18 }
  0xfd   : > { %2160 = vrot.lane.b32.xlu0 %v2159_v37, %s2503_s29  ;;  %v3044_v49 = vpack.i.bf16 %v869_v43, %v867_v42  ;;  %v879_v14 = vsel %vm839_vm5, %v876_v0, %v878_v1  ;;  %v2063_v43 = vld [vmem:[%s3564_s2] sm:$0xff] }
 0x101   : > { %2180 = vrot.lane.b32.xlu1 %v2154_v36, %s2496_s20  ;;  %v870_v36 = vrot.slane %v2991_v18, 2 }
 0x102   : > { %2170 = vrot.lane.b32.xlu2 %v2144_v15, %s2497_s21  ;;  %v824_v15 = vrot.slane %v2979_v12, 1 }
 0x104   : > { %v826_v24 = vsel %vm798_vm4, %v824_v15, %v825_v16  ;;  %v770_v15 = vld [vmem:[%s2864_s19 + $0xd0] sm:$0x3] }
 0x105   : > { %2175 = vrot.lane.b32.xlu0 %v2149_v32, %s2500_s25  ;;  %v3006_v26 = vpack.i.bf16 %v828_v25, %v826_v24  ;;  %v3016_v32 = vpack.i.bf16 %v2982_v13, %v2979_v12  ;;  %v886_v22 = vrot.slane %v770_v15, 1  ;;  %v888_v24 = vrot.slane %v768_v61, 2 }
 0x106   : > { %v889_v25 = vrot.slane %v769_v62, 2  ;;  %v891_v27 = vrot.slane %v770_v15, 2 }
 0x107   : > { %v887_v30 = vsel %vm798_vm4, %v884_v21, %v886_v22 }
 0x108   : > { %v890_v35 = vsel %vm839_vm5, %v888_v24, %v889_v25 }
 0x109   : > { %2195 = vrot.lane.b32.xlu1 %v2194_v40, %s2502_s28 }
 0x10a   : > { %2185 = vrot.lane.b32.xlu2 %v2159_v37, %s2498_s23 }
 0x10d   : > { %2190 = vrot.lane.b32.xlu0 %v2164_v33, %s2499_s24 }
 0x111   : > { %2210 = vrot.lane.b32.xlu1 %v2159_v37, %s2497_s21  ;;  %v871_v37 = vrot.slane %v2994_v19, 2 }
 0x112   : > { %2200 = vrot.lane.b32.xlu2 %v2199_v54, %s2503_s29 }
 0x113   : > { %v872_v44 = vsel %vm839_vm5, %v870_v36, %v871_v37  ;;  %v892_v36 = vsel %vm839_vm5, %v889_v25, %v891_v27 }
 0x114   : > { %v3097_v42 = vpack.i.bf16 %v892_v36, %v890_v35 }
 0x115   : > { %2205 = vrot.lane.b32.xlu0 %v2204_v55, %s2501_s27 }
 0x119   : > { %2225 = vrot.lane.b32.xlu1 %v2199_v54, %s2498_s23 }
 0x11a   : > { %2215 = vrot.lane.b32.xlu2 %v2164_v33, %s2500_s25  ;;  %v3021_v33 = vld [vmem:[%s2864_s19 + $0xa8] sm:$0xff] }
 0x11b   : > { %v3030_v41 = vpack.i.bf16 %v3024_v34, %v3021_v33  ;;  %v875_v63 = vrot.slane %v3021_v33, 2 }
 0x11d   : > { %2220 = vrot.lane.b32.xlu0 %v2194_v40, %s2496_s20  ;;  %v873_v40 = vrot.slane %v764_v20, 2  ;;  %v877_v8 = vsel %vm839_vm5, %v875_v63, %v876_v0  ;;  %v883_v20 = vrot.slane %v768_v61, 1 }
 0x11e   : > { %v3075_v17 = vpack.i.bf16 %v879_v14, %v877_v8 }
 0x11f   : > { %v874_v45 = vsel %vm839_vm5, %v871_v37, %v873_v40  ;;  %v885_v28 = vsel %vm798_vm4, %v883_v20, %v884_v21  ;;  %v773_v20 = vld [vmem:[%s2864_s19 + $0xe8] sm:$0x3] }
 0x120   : > { %v3046_v50 = vpack.i.bf16 %v874_v45, %v872_v44  ;;  %v3093_v40 = vpack.i.bf16 %v887_v30, %v885_v28  ;;  %v904_v36 = vrot.slane %v773_v20, 2 }
 0x121   : > { %2240 = vrot.lane.b32.xlu1 %v2963_v2, %s2503_s29 }
 0x122   : > { %2230 = vrot.lane.b32.xlu2 %v2204_v55, %s2499_s24 }
 0x125   : > { %2235 = vrot.lane.b32.xlu0 %v2234_v3, %s2502_s28 }
 0x129   : > { %2255 = vrot.lane.b32.xlu1 %v2204_v55, %s2500_s25  ;;  %v835_v55 = vrot.slane %v3024_v34, 1 }
 0x12a   : > { %2245 = vrot.lane.b32.xlu2 %v2975_v11, %s2501_s27 }
 0x12b   : > { %v838_v6 = vsel %vm798_vm4, %v835_v55, %v837_v60 }
 0x12d   : > { %2250 = vrot.lane.b32.xlu0 %v2199_v54, %s2497_s21  ;;  %v834_v54 = vrot.slane %v3021_v33, 1 }
 0x12f   : > { %v836_v5 = vsel %vm798_vm4, %v834_v54, %v835_v55 }
 0x130   : > { %v3071_v16 = vpack.i.bf16 %v838_v6, %v836_v5 }
 0x131   : > { %2270 = vrot.lane.b32.xlu1 %v2975_v11, %s2499_s24 }
 0x132   : > { %2260 = vrot.lane.b32.xlu2 %v2234_v3, %s2496_s20  ;;  %v1497_v3 = vsel %vm1495_vm6, %v1465_v53, 0 }
 0x133   : > { %1502 = vmatpush.bf16.msra.mxu0 %v1497_v3  ;;  %2071 = vmatpush.bf16.msra.mxu3 %v1497_v3 }
 0x135   : > { %2265 = vrot.lane.b32.xlu0 %v2963_v2, %s2498_s23 }
 0x137   : > { %1503 = vmatpush.bf16.msra.mxu0 %v2066_v7  ;;  %2072 = vmatpush.bf16.msra.mxu3 %v2066_v7  ;;  %v3137_v7 = vld [vmem:[%s2864_s19 + $0xd8] sm:$0xff] }
 0x138   : > { %v901_v27 = vrot.slane %v3137_v7, 2 }
 0x139   : > { %2285 = vrot.lane.b32.xlu1 %v3006_v26, %s2503_s29 }
 0x13a   : > { %2275 = vrot.lane.b32.xlu2 %v3016_v32, %s2502_s28 }
 0x13b   : > { %1504 = vmatpush.bf16.msra.mxu0 %v2065_v23  ;;  %2073 = vmatpush.bf16.msra.mxu3 %v2065_v23 }
 0x13d   : > { %2280 = vrot.lane.b32.xlu0 %v3010_v29, %s2497_s21 }
 0x13f   : > { %1505 = vmatpush.bf16.msra.mxu0 %v2064_v31  ;;  %2074 = vmatpush.bf16.msra.mxu3 %v2064_v31 }
 0x141   : > { %2300 = vrot.lane.b32.xlu1 %v3030_v41, %s2496_s20 }
 0x142   : > { %2290 = vrot.lane.b32.xlu2 %v3046_v50, %s2500_s25 }
 0x143   : > { %1506 = vmatpush.bf16.msra.mxu0 %v2063_v43  ;;  %2075 = vmatpush.bf16.msra.mxu3 %v2063_v43 }
 0x145   : > { %2295 = vrot.lane.b32.xlu0 %v3044_v49, %s2501_s27 }
 0x149   : > { %2315 = vrot.lane.b32.xlu1 %v3061_v4, %s2502_s28 }
 0x14a   : > { %2305 = vrot.lane.b32.xlu2 %v3071_v16, %s2498_s23 }
 0x14c   : > { %v3091_v37 = vpop.permute.xlu2 %2150 }
 0x14d   : > { %2310 = vrot.lane.b32.xlu0 %v3075_v17, %s2499_s24  ;;  %v2152_v21 = vunpack.i.l.bf16 %v3091_v37 }
 0x151   : > { %2330 = vrot.lane.b32.xlu1 %v2963_v2, %s2497_s21 }
 0x152   : > { %2320 = vrot.lane.b32.xlu2 %v3093_v40, %s2503_s29 }
 0x154   : > { %v3106_v44 = vpop.permute.xlu2 %2155 }
 0x155   : > { %2325 = vrot.lane.b32.xlu0 %v3097_v42, %s2501_s27  ;;  %v2158_v24 = vunpack.i.h.bf16 %v3106_v44  ;;  %v2157_v25 = vunpack.i.l.bf16 %v3106_v44  ;;  %v896_v44 = vrot.slane %v3137_v7, 1 }
 0x159   : > { %2345 = vrot.lane.b32.xlu1 %v3006_v26, %s2498_s23 }
 0x15a   : > { %2335 = vrot.lane.b32.xlu2 %v2975_v11, %s2500_s25 }
 0x15b   : > { %v2141_v2 = vpop.permute.xlu1 %2140 }
 0x15c   : > { %v3114_v45 = vpop.permute.xlu2 %2170  ;;  %v2143_v63 = vunpack.i.h.bf16 %v2141_v2  ;;  %v2142_v0 = vunpack.i.l.bf16 %v2141_v2 }
 0x15d   : > { %2340 = vrot.lane.b32.xlu0 %v3016_v32, %s2496_s20 }
 0x15f   : > { %v2131_v46 = vpop.permute.xlu0 %2130 }
 0x160   : > { %v2133_v53 = vunpack.i.h.bf16 %v2131_v46  ;;  %v2132_v54 = vunpack.i.l.bf16 %v2131_v46 }
 0x161   : > { %2360 = vrot.lane.b32.xlu1 %v3071_v16, %s2497_s21 }
 0x162   : > { %2350 = vrot.lane.b32.xlu2 %v3044_v49, %s2499_s24  ;;  %v1292_v1 = vsel %vm1290_vm7, %v2878_v59, %v2133_v53  ;;  %v1291_v3 = vsel %vm1290_vm7, %v2873_v57, %v2132_v54  ;;  %v772_v59 = vld [vmem:[%s2864_s19 + $0xe0] sm:$0xff]  ;;  %v2153_v57 = vunpack.i.h.bf16 %v3091_v37  ;;  %s2067_s19 = sshll.u32 %s2477_s30, 7 }
 0x163   : > { %v2146_v48 = vpop.permute.xlu1 %2145  ;;  %v902_v35 = vrot.slane %v772_v59, 2 }
 0x164   : > { %v3126_v11 = vpop.permute.xlu2 %2185  ;;  %v2148_v55 = vunpack.i.h.bf16 %v2146_v48  ;;  %v2147_v60 = vunpack.i.l.bf16 %v2146_v48 }
 0x165   : > { %2355 = vrot.lane.b32.xlu0 %v3120_v47, %s2502_s28 }
 0x167   : > { %v2136_v32 = vpop.permute.xlu0 %2135 }
 0x168   : > { %v2138_v61 = vunpack.i.h.bf16 %v2136_v32  ;;  %v2137_v62 = vunpack.i.l.bf16 %v2136_v32  ;;  %v897_v32 = vrot.slane %v772_v59, 1 }
 0x169   : > { %2375 = vrot.lane.b32.xlu1 %v3046_v50, %s2501_s27 }
 0x16a   : > { %v1308_v5 = vsel %vm1307_vm8, %v1291_v3, %v2137_v62  ;;  %v1309_v6 = vsel %vm1307_vm8, %v1292_v1, %v2138_v61  ;;  %2365 = vrot.lane.b32.xlu2 %v3010_v29, %s2503_s29  ;;  %v903_v62 = vsel %vm839_vm5, %v901_v27, %v902_v35 }
 0x16b   : > { %v1325_v8 = vsel %vm1324_vm9, %v1308_v5, %v2142_v0  ;;  %v1326_v14 = vsel %vm1324_vm9, %v1309_v6, %v2143_v63  ;;  %v2166_v15 = vpop.permute.xlu1 %2165  ;;  %v905_v63 = vsel %vm839_vm5, %v902_v35, %v904_v36  ;;  %v2172_v6 = vunpack.i.l.bf16 %v3114_v45 }
 0x16c   : > { %v1342_v22 = vsel %vm1341_vm10, %v1325_v8, %v2147_v60  ;;  %v1343_v23 = vsel %vm1341_vm10, %v1326_v14, %v2148_v55  ;;  %v3156_v31 = vpop.permute.xlu2 %2200  ;;  %v2168_v37 = vunpack.i.h.bf16 %v2166_v15  ;;  %v2167_v43 = vunpack.i.l.bf16 %v2166_v15 }
 0x16d   : > { %2370 = vrot.lane.b32.xlu0 %v3075_v17, %s2500_s25  ;;  %v1359_v28 = vsel %vm1358_vm11, %v1342_v22, %v2152_v21  ;;  %v1360_v30 = vsel %vm1358_vm11, %v1343_v23, %v2153_v57  ;;  %v899_v55 = vrot.slane %v773_v20, 1  ;;  %v2404_v8 = vpack.i.bf16 %v905_v63, %v903_v62 }
 0x16e   : > { %v1376_v53 = vsel %vm1375_vm12, %v1359_v28, %v2157_v25  ;;  %v1377_v54 = vsel %vm1375_vm12, %v1360_v30, %v2158_v24  ;;  %v898_v14 = vsel %vm798_vm4, %v896_v44, %v897_v32 }
 0x16f   : > { %v2161_v2 = vpop.permute.xlu0 %2160  ;;  %v900_v15 = vsel %vm798_vm4, %v897_v32, %v899_v55  ;;  %v2203_v32 = vunpack.i.h.bf16 %v3156_v31  ;;  %v2202_v55 = vunpack.i.l.bf16 %v3156_v31 }
 0x170   : > { %v2163_v46 = vunpack.i.h.bf16 %v2161_v2  ;;  %v2162_v48 = vunpack.i.l.bf16 %v2161_v2  ;;  %v2399_v23 = vpack.i.bf16 %v900_v15, %v898_v14 }
 0x171   : > { %2390 = vrot.lane.b32.xlu1 %v3097_v42, %s2499_s24  ;;  %v2173_v42 = vunpack.i.h.bf16 %v3114_v45 }
 0x172   : > { %v1393_v60 = vsel %vm1392_vm13, %v1376_v53, %v2162_v48  ;;  %v1394_v61 = vsel %vm1392_vm13, %v1377_v54, %v2163_v46  ;;  %2380 = vrot.lane.b32.xlu2 %v3061_v4, %s2496_s20  ;;  %v2394_v4 = vpack.i.bf16 %v772_v59, %v3137_v7  ;;  %v2188_v7 = vunpack.i.h.bf16 %v3126_v11 }
 0x173   : > { %v2181_v0 = vpop.permute.xlu1 %2180  ;;  %v1410_v1 = vsel %vm1409_vm14, %v1393_v60, %v2167_v43  ;;  %v1411_v3 = vsel %vm1409_vm14, %v1394_v61, %v2168_v37  ;;  %v1294_v45 = vsel %vm1290_vm7, %v2870_v52, %v2173_v42  ;;  %v2187_v52 = vunpack.i.l.bf16 %v3126_v11 }
 0x174   : > { %v1426_v5 = vpack.c.bf16 %v1411_v3, %v1410_v1  ;;  %v3178_v20 = vpop.permute.xlu2 %2215  ;;  %v2183_v24 = vunpack.i.h.bf16 %v2181_v0  ;;  %v2182_v25 = vunpack.i.l.bf16 %v2181_v0 }
 0x175   : > { %2385 = vrot.lane.b32.xlu0 %v3093_v40, %s2498_s23  ;;  %v1293_v40 = vsel %vm1290_vm7, %v2867_v51, %v2172_v6  ;;  %v2217_v14 = vunpack.i.l.bf16 %v3178_v20 }
 0x176   : > { %2035 = vmatmul.msk.bf16.vlgmr.msra.gmra.mxu0 %vm1470_vm15, %v1426_v5 }
 0x177   : > { %v2176_v57 = vpop.permute.xlu0 %2175 }
 0x178   : > { %v2178_v21 = vunpack.i.h.bf16 %v2176_v57  ;;  %v2177_v22 = vunpack.i.l.bf16 %v2176_v57 }
 0x179   : > { %2405 = vrot.lane.b32.xlu1 %v2404_v8, %s2501_s27  ;;  %v2218_v8 = vunpack.i.h.bf16 %v3178_v20 }
 0x17a   : > { %v1311_v28 = vsel %vm1307_vm8, %v1294_v45, %v2178_v21  ;;  %v1310_v30 = vsel %vm1307_vm8, %v1293_v40, %v2177_v22  ;;  %2395 = vrot.lane.b32.xlu2 %v2394_v4, %s2502_s28 }
 0x17b   : > { %v2196_v27 = vpop.permute.xlu1 %2195  ;;  %v1328_v51 = vsel %vm1324_vm9, %v1311_v28, %v2183_v24  ;;  %v1327_v35 = vsel %vm1324_vm9, %v1310_v30, %v2182_v25 }
 0x17c   : > { %v3192_v59 = vpop.permute.xlu2 %2230  ;;  %v2198_v2 = vunpack.i.h.bf16 %v2196_v27  ;;  %v2197_v46 = vunpack.i.l.bf16 %v2196_v27  ;;  %v1344_v48 = vsel %vm1341_vm10, %v1327_v35, %v2187_v52  ;;  %v1345_v44 = vsel %vm1341_vm10, %v1328_v51, %v2188_v7 }
 0x17d   : > { %2400 = vrot.lane.b32.xlu0 %v2399_v23, %s2503_s29  ;;  %v2232_v24 = vunpack.i.l.bf16 %v3192_v59 }
 0x17f   : > { %v2191_v36 = vpop.permute.xlu0 %2190 }
 0x180   : > { %v2193_v37 = vunpack.i.h.bf16 %v2191_v36  ;;  %v2192_v43 = vunpack.i.l.bf16 %v2191_v36 }
 0x181   : > { %2420 = vrot.lane.b32.xlu1 %v3120_v47, %s2496_s20  ;;  %s3302_s20 = scalar_lea.vmem %s2590_s22, %s2067_s19 }
 0x182   : > { %v1361_v11 = vsel %vm1358_vm11, %v1344_v48, %v2192_v43  ;;  %v1362_v53 = vsel %vm1358_vm11, %v1345_v44, %v2193_v37  ;;  %2410 = vrot.lane.b32.xlu2 %v3006_v26, %s2497_s21 }
 0x183   : > { %v2211_v54 = vpop.permute.xlu1 %2210  ;;  %v1378_v47 = vsel %vm1375_vm12, %v1361_v11, %v2197_v46  ;;  %v1379_v60 = vsel %vm1375_vm12, %v1362_v53, %v2198_v2 }
 0x184   : > { %v2246_v61 = vpop.permute.xlu2 %2245  ;;  %v2213_v1 = vunpack.i.h.bf16 %v2211_v54  ;;  %v2212_v3 = vunpack.i.l.bf16 %v2211_v54  ;;  %v1395_v5 = vsel %vm1392_vm13, %v1378_v47, %v2202_v55  ;;  %v1396_v26 = vsel %vm1392_vm13, %v1379_v60, %v2203_v32 }
 0x185   : > { %2415 = vrot.lane.b32.xlu0 %v3044_v49, %s2500_s25  ;;  %v2248_v51 = vunpack.i.h.bf16 %v2246_v61  ;;  %v2247_v35 = vunpack.i.l.bf16 %v2246_v61 }
 0x186   : > { %v1296_v15 = vsel %vm1290_vm7, %v2895_v10, %v2213_v1  ;;  %v1295_v57 = vsel %vm1290_vm7, %v2892_v9, %v2212_v3 }
 0x187   : > { %v2206_v62 = vpop.permute.xlu0 %2205  ;;  %v1312_v22 = vsel %vm1307_vm8, %v1295_v57, %v2217_v14  ;;  %v1313_v20 = vsel %vm1307_vm8, %v1296_v15, %v2218_v8 }
 0x188   : > { %v2208_v63 = vunpack.i.h.bf16 %v2206_v62  ;;  %v2207_v0 = vunpack.i.l.bf16 %v2206_v62 }
 0x189   : > { %2435 = vrot.lane.b32.xlu1 %v3030_v41, %s2502_s28 }
 0x18a   : > { %v1412_v31 = vsel %vm1409_vm14, %v1395_v5, %v2207_v0  ;;  %v1413_v49 = vsel %vm1409_vm14, %v1396_v26, %v2208_v63  ;;  %2425 = vrot.lane.b32.xlu2 %v3010_v29, %s2498_s23 }
 0x18b   : > { %v2226_v42 = vpop.permute.xlu1 %2225  ;;  %v1427_v6 = vpack.c.bf16 %v1413_v49, %v1412_v31 }
 0x18c   : > { %v2261_v41 = vpop.permute.xlu2 %2260  ;;  %v2228_v29 = vunpack.i.h.bf16 %v2226_v42  ;;  %v2227_v40 = vunpack.i.l.bf16 %v2226_v42 }
 0x18d   : > { %2430 = vrot.lane.b32.xlu0 %v3046_v50, %s2499_s24  ;;  %2036 = vmatmul.msk.bf16.gmra.mxu0 %vm1470_vm15, %v1427_v6  ;;  %v2233_v50 = vunpack.i.h.bf16 %v3192_v59  ;;  %v2263_v26 = vunpack.i.h.bf16 %v2261_v41  ;;  %v2262_v31 = vunpack.i.l.bf16 %v2261_v41 }
 0x18f   : > { %v2221_v21 = vpop.permute.xlu0 %2220 }
 0x190   : > { %v2223_v4 = vunpack.i.h.bf16 %v2221_v21  ;;  %v2222_v45 = vunpack.i.l.bf16 %v2221_v21 }
 0x192   : > { %v1330_v10 = vsel %vm1324_vm9, %v1313_v20, %v2223_v4  ;;  %v1329_v23 = vsel %vm1324_vm9, %v1312_v22, %v2222_v45  ;;  %2440 = vrot.lane.b32.xlu2 %v3071_v16, %s2503_s29 }
 0x193   : > { %v2241_v9 = vpop.permute.xlu1 %2240  ;;  %v1347_v25 = vsel %vm1341_vm10, %v1330_v10, %v2228_v29  ;;  %v1346_v27 = vsel %vm1341_vm10, %v1329_v23, %v2227_v40 }
 0x194   : > { %v2276_v28 = vpop.permute.xlu2 %2275  ;;  %v2243_v30 = vunpack.i.h.bf16 %v2241_v9  ;;  %v2242_v7 = vunpack.i.l.bf16 %v2241_v9  ;;  %v1363_v16 = vsel %vm1358_vm11, %v1346_v27, %v2232_v24  ;;  %v1364_v43 = vsel %vm1358_vm11, %v1347_v25, %v2233_v50 }
 0x195   : > { %2445 = vrot.lane.b32.xlu0 %v3075_v17, %s2501_s27  ;;  %v2278_v41 = vunpack.i.h.bf16 %v2276_v28  ;;  %v2277_v45 = vunpack.i.l.bf16 %v2276_v28 }
 0x197   : > { %v2236_v52 = vpop.permute.xlu0 %2235 }
 0x198   : > { %v2238_v36 = vunpack.i.h.bf16 %v2236_v52  ;;  %v2237_v37 = vunpack.i.l.bf16 %v2236_v52 }
 0x19a   : > { %v1380_v59 = vsel %vm1375_vm12, %v1363_v16, %v2237_v37  ;;  %v1381_v17 = vsel %vm1375_vm12, %v1364_v43, %v2238_v36 }
 0x19b   : > { %v2256_v2 = vpop.permute.xlu1 %2255  ;;  %v1397_v46 = vsel %vm1392_vm13, %v1380_v59, %v2242_v7  ;;  %v1398_v48 = vsel %vm1392_vm13, %v1381_v17, %v2243_v30 }
 0x19c   : > { %v1414_v44 = vsel %vm1409_vm14, %v1397_v46, %v2247_v35  ;;  %v1415_v11 = vsel %vm1409_vm14, %v1398_v48, %v2248_v51  ;;  %v2291_v32 = vpop.permute.xlu2 %2290  ;;  %v2258_v62 = vunpack.i.h.bf16 %v2256_v2  ;;  %v2257_v63 = vunpack.i.l.bf16 %v2256_v2 }
 0x19d   : > { %v1428_v53 = vpack.c.bf16 %v1415_v11, %v1414_v44  ;;  %v2293_v28 = vunpack.i.h.bf16 %v2291_v32  ;;  %v2292_v35 = vunpack.i.l.bf16 %v2291_v32 }
 0x19f   : > { %v2251_v54 = vpop.permute.xlu0 %2250  ;;  %2037 = vmatmul.msk.bf16.gmra.mxu0 %vm1470_vm15, %v1428_v53 }
 0x1a0   : > { %v2253_v47 = vunpack.i.h.bf16 %v2251_v54  ;;  %v2252_v60 = vunpack.i.l.bf16 %v2251_v54 }
 0x1a2   : > { %v1298_v1 = vsel %vm1290_vm7, %v2928_v39, %v2253_v47  ;;  %v1297_v3 = vsel %vm1290_vm7, %v2925_v38, %v2252_v60 }
 0x1a3   : > { %v2271_v55 = vpop.permute.xlu1 %2270  ;;  %v1315_v49 = vsel %vm1307_vm8, %v1298_v1, %v2258_v62  ;;  %v1314_v42 = vsel %vm1307_vm8, %v1297_v3, %v2257_v63 }
 0x1a4   : > { %v2306_v0 = vpop.permute.xlu2 %2305  ;;  %v2273_v15 = vunpack.i.h.bf16 %v2271_v55  ;;  %v2272_v57 = vunpack.i.l.bf16 %v2271_v55  ;;  %v1331_v21 = vsel %vm1324_vm9, %v1314_v42, %v2262_v31  ;;  %v1332_v22 = vsel %vm1324_vm9, %v1315_v49, %v2263_v26 }
 0x1a5   : > { %v2308_v53 = vunpack.i.h.bf16 %v2306_v0 }
 0x1a7   : > { %v2266_v61 = vpop.permute.xlu0 %2265 }
 0x1a8   : > { %v2268_v6 = vunpack.i.h.bf16 %v2266_v61  ;;  %v2267_v8 = vunpack.i.l.bf16 %v2266_v61 }
 0x1aa   : > { %v1348_v39 = vsel %vm1341_vm10, %v1331_v21, %v2267_v8  ;;  %v1349_v38 = vsel %vm1341_vm10, %v1332_v22, %v2268_v6 }
 0x1ab   : > { %v2286_v5 = vpop.permute.xlu1 %2285  ;;  %v1365_v29 = vsel %vm1358_vm11, %v1348_v39, %v2272_v57  ;;  %v1366_v40 = vsel %vm1358_vm11, %v1349_v38, %v2273_v15 }
 0x1ac   : > { %v2321_v20 = vpop.permute.xlu2 %2320  ;;  %v2288_v10 = vunpack.i.h.bf16 %v2286_v5  ;;  %v2287_v23 = vunpack.i.l.bf16 %v2286_v5  ;;  %v1382_v25 = vsel %vm1375_vm12, %v1365_v29, %v2277_v45  ;;  %v1383_v27 = vsel %vm1375_vm12, %v1366_v40, %v2278_v41 }
 0x1ad   : > { %v2323_v26 = vunpack.i.h.bf16 %v2321_v20 }
 0x1ae   : > { %v1399_v52 = vsel %vm1392_vm13, %v1382_v25, %v2287_v23  ;;  %v1400_v51 = vsel %vm1392_vm13, %v1383_v27, %v2288_v10 }
 0x1af   : > { %v2281_v14 = vpop.permute.xlu0 %2280 }
 0x1b0   : > { %v2283_v9 = vunpack.i.h.bf16 %v2281_v14  ;;  %v2282_v50 = vunpack.i.l.bf16 %v2281_v14 }
 0x1b2   : > { %v1304_v36 = vsel %vm1290_vm7, %v2994_v19, %v2283_v9  ;;  %v1303_v43 = vsel %vm1290_vm7, %v2991_v18, %v2282_v50  ;;  %v2307_v19 = vunpack.i.l.bf16 %v2306_v0  ;;  %v2322_v0 = vunpack.i.l.bf16 %v2321_v20 }
 0x1b3   : > { %v2301_v4 = vpop.permute.xlu1 %2300  ;;  %v1320_v44 = vsel %vm1307_vm8, %v1303_v43, %v2292_v35  ;;  %v1321_v11 = vsel %vm1307_vm8, %v1304_v36, %v2293_v28 }
 0x1b4   : > { %v2303_v59 = vunpack.i.h.bf16 %v2301_v4  ;;  %v2302_v17 = vunpack.i.l.bf16 %v2301_v4  ;;  %v2336_v48 = vpop.permute.xlu2 %2335 }
 0x1b5   : > { %v2338_v41 = vunpack.i.h.bf16 %v2336_v48  ;;  %v2337_v45 = vunpack.i.l.bf16 %v2336_v48 }
 0x1b6   : > { %v1337_v54 = vsel %vm1324_vm9, %v1320_v44, %v2302_v17  ;;  %v1338_v32 = vsel %vm1324_vm9, %v1321_v11, %v2303_v59 }
 0x1b7   : > { %v2296_v24 = vpop.permute.xlu0 %2295  ;;  %v1354_v60 = vsel %vm1341_vm10, %v1337_v54, %v2307_v19  ;;  %v1355_v61 = vsel %vm1341_vm10, %v1338_v32, %v2308_v53  ;;  %v1747_v53 = vld [vmem:[%s3566_s4] sm:$0x3] }
 0x1b8   : > { %v2298_v30 = vunpack.i.h.bf16 %v2296_v24  ;;  %v2297_v7 = vunpack.i.l.bf16 %v2296_v24  ;;  %v1775_v32 = vsel %vm1773_vm0, %v1747_v53, 0 }
 0x1b9   : > { %1784 = vmatpush.bf16.msra.mxu2 %v1775_v32 }
 0x1ba   : > { %v1416_v37 = vsel %vm1409_vm14, %v1399_v52, %v2297_v7  ;;  %v1417_v16 = vsel %vm1409_vm14, %v1400_v51, %v2298_v30 }
 0x1bb   : > { %v2316_v2 = vpop.permute.xlu1 %2315  ;;  %v1429_v46 = vpack.c.bf16 %v1417_v16, %v1416_v37 }
 0x1bc   : > { %v2318_v62 = vunpack.i.h.bf16 %v2316_v2  ;;  %v2317_v63 = vunpack.i.l.bf16 %v2316_v2  ;;  %v2351_v42 = vpop.permute.xlu2 %2350 }
 0x1bd   : > { %2038 = vmatmul.msk.bf16.gmra.mxu0 %vm1470_vm15, %v1429_v46  ;;  %v2352_v51 = vunpack.i.l.bf16 %v2351_v42 }
 0x1bf   : > { %v2311_v55 = vpop.permute.xlu0 %2310 }
 0x1c0   : > { %v2313_v47 = vunpack.i.h.bf16 %v2311_v55  ;;  %v2312_v18 = vunpack.i.l.bf16 %v2311_v55 }
 0x1c2   : > { %v1371_v1 = vsel %vm1358_vm11, %v1354_v60, %v2312_v18  ;;  %v1372_v3 = vsel %vm1358_vm11, %v1355_v61, %v2313_v47  ;;  %v1723_v18 = vld [vmem:[%s3302_s20] sm:$0xff]  ;;  %v1724_v60 = vld [vmem:[%s3302_s20 + $0x8] sm:$0xff] }
 0x1c3   : > { %v2331_v5 = vpop.permute.xlu1 %2330  ;;  %v1388_v31 = vsel %vm1375_vm12, %v1371_v1, %v2317_v63  ;;  %v1389_v49 = vsel %vm1375_vm12, %v1372_v3, %v2318_v62  ;;  %v1739_v63 = vpack.c.bf16 %v1724_v60, %v1723_v18 }
 0x1c4   : > { %v1405_v15 = vsel %vm1392_vm13, %v1388_v31, %v2322_v0  ;;  %v1406_v57 = vsel %vm1392_vm13, %v1389_v49, %v2323_v26  ;;  %v2333_v21 = vunpack.i.h.bf16 %v2331_v5  ;;  %v2332_v22 = vunpack.i.l.bf16 %v2331_v5  ;;  %v2366_v25 = vpop.permute.xlu2 %2365  ;;  %v1608_v5 = vld [vmem:[%s3565_s3] sm:$0xf] }
 0x1c5   : > { %v2368_v17 = vunpack.i.h.bf16 %v2366_v25  ;;  %v2367_v2 = vunpack.i.l.bf16 %v2366_v25  ;;  %2052 = vmatmul.msk.bf16.vlgmr.msra.gmra.mxu2 %vm1748_vm1, %v1739_v63  ;;  %v1634_v31 = vsel %vm1495_vm6, %v1608_v5, 0 }
 0x1c6   : > { %v1300_v29 = vsel %vm1290_vm7, %v2951_v58, %v2333_v21  ;;  %v1299_v40 = vsel %vm1290_vm7, %v2948_v56, %v2332_v22  ;;  %v2353_v56 = vunpack.i.h.bf16 %v2351_v42  ;;  %1643 = vmatpush.bf16.msra.mxu1 %v1634_v31  ;;  %2076 = vmatpush.bf16.msrb.mxu3 %v1634_v31 }
 0x1c7   : > { %v2326_v6 = vpop.permute.xlu0 %2325  ;;  %v1316_v23 = vsel %vm1307_vm8, %v1299_v40, %v2337_v45  ;;  %v1317_v9 = vsel %vm1307_vm8, %v1300_v29, %v2338_v41 }
 0x1c8   : > { %v2328_v8 = vunpack.i.h.bf16 %v2326_v6  ;;  %v2327_v14 = vunpack.i.l.bf16 %v2326_v6 }
 0x1ca   : > { %v1422_v39 = vsel %vm1409_vm14, %v1405_v15, %v2327_v14  ;;  %v1423_v38 = vsel %vm1409_vm14, %v1406_v57, %v2328_v8 }
 0x1cb   : > { %v2346_v4 = vpop.permute.xlu1 %2345  ;;  %v1432_v20 = vpack.c.bf16 %v1423_v38, %v1422_v39 }
 0x1cc   : > { %v2348_v27 = vunpack.i.h.bf16 %v2346_v4  ;;  %v2347_v30 = vunpack.i.l.bf16 %v2346_v4  ;;  %v2381_v44 = vpop.permute.xlu2 %2380 }
 0x1cd   : > { %2041 = vmatmul.msk.bf16.vlgmr.msra.gmra.mxu3 %vm1470_vm15, %v1432_v20  ;;  %v2383_v57 = vunpack.i.h.bf16 %v2381_v44  ;;  %v2382_v21 = vunpack.i.l.bf16 %v2381_v44 }
 0x1ce   : > { %2077 = vmatpush.bf16.msra.mxu3 %v1775_v32  ;;  %v3352_v32 = vld [vmem:[%s3568_s6 + $0x1] ss:$0 sm:$0xff] }
 0x1cf   : > { %v2341_v10 = vpop.permute.xlu0 %2340 }
 0x1d0   : > { %v2343_v50 = vunpack.i.h.bf16 %v2341_v10  ;;  %v2342_v24 = vunpack.i.l.bf16 %v2341_v10 }
 0x1d2   : > { %v1334_v7 = vsel %vm1324_vm9, %v1317_v9, %v2343_v50  ;;  %v1333_v58 = vsel %vm1324_vm9, %v1316_v23, %v2342_v24 }
 0x1d3   : > { %v2361_v52 = vpop.permute.xlu1 %2360  ;;  %v1350_v28 = vsel %vm1341_vm10, %v1333_v58, %v2347_v30  ;;  %v1351_v35 = vsel %vm1341_vm10, %v1334_v7, %v2348_v27 }
 0x1d4   : > { %v1367_v43 = vsel %vm1358_vm11, %v1350_v28, %v2352_v51  ;;  %v1368_v59 = vsel %vm1358_vm11, %v1351_v35, %v2353_v56  ;;  %v2363_v26 = vunpack.i.h.bf16 %v2361_v52  ;;  %v2362_v0 = vunpack.i.l.bf16 %v2361_v52  ;;  %v2396_v15 = vpop.permute.xlu2 %2395 }
 0x1d5   : > { %v2398_v23 = vunpack.i.h.bf16 %v2396_v15  ;;  %v2397_v9 = vunpack.i.l.bf16 %v2396_v15 }
 0x1d6   : > { %v1306_v8 = vsel %vm1290_vm7, %v3024_v34, %v2363_v26  ;;  %v1305_v14 = vsel %vm1290_vm7, %v3021_v33, %v2362_v0 }
 0x1d7   : > { %v2356_v36 = vpop.permute.xlu0 %2355 }
 0x1d8   : > { %v2358_v37 = vunpack.i.h.bf16 %v2356_v36  ;;  %v2357_v16 = vunpack.i.l.bf16 %v2356_v36 }
 0x1da   : > { %v1384_v46 = vsel %vm1375_vm12, %v1367_v43, %v2357_v16  ;;  %v1385_v48 = vsel %vm1375_vm12, %v1368_v59, %v2358_v37  ;;  %v3340_v59 = vld [vmem:[%s3568_s6] ss:$0 sm:$0xff] }
 0x1db   : > { %v2376_v11 = vpop.permute.xlu1 %2375  ;;  %v1401_v55 = vsel %vm1392_vm13, %v1384_v46, %v2367_v2  ;;  %v1402_v47 = vsel %vm1392_vm13, %v1385_v48, %v2368_v17  ;;  %v1725_v2 = vld [vmem:[%s3302_s20 + $0x10] sm:$0xff]  ;;  %v1726_v46 = vld [vmem:[%s3302_s20 + $0x18] sm:$0xff] }
 0x1dc   : > { %v2378_v19 = vunpack.i.h.bf16 %v2376_v11  ;;  %v2377_v54 = vunpack.i.l.bf16 %v2376_v11  ;;  %v2411_v25 = vpop.permute.xlu2 %2410  ;;  %v1740_v11 = vpack.c.bf16 %v1726_v46, %v1725_v2 }
 0x1dd   : > { %v2412_v43 = vunpack.i.l.bf16 %v2411_v25  ;;  %v2413_v48 = vunpack.i.h.bf16 %v2411_v25 }
 0x1de   : > { %v1418_v61 = vsel %vm1409_vm14, %v1401_v55, %v2377_v54  ;;  %v1419_v62 = vsel %vm1409_vm14, %v1402_v47, %v2378_v19  ;;  %2053 = vmatmul.msk.bf16.gmra.mxu2 %vm1748_vm1, %v1740_v11  ;;  %v1730_v11 = vld [vmem:[%s3302_s20 + $0x38] sm:$0xff] }
 0x1df   : > { %v2371_v1 = vpop.permute.xlu0 %2370  ;;  %v1430_v3 = vpack.c.bf16 %v1419_v62, %v1418_v61  ;;  %v1301_v19 = vsel %vm1290_vm7, %v2979_v12, %v2412_v43  ;;  %v1302_v60 = vsel %vm1290_vm7, %v2982_v13, %v2413_v48 }
 0x1e0   : > { %v2373_v49 = vunpack.i.h.bf16 %v2371_v1  ;;  %v2372_v42 = vunpack.i.l.bf16 %v2371_v1 }
 0x1e1   : > { %2039 = vmatmul.msk.bf16.gmra.mxu0 %vm1470_vm15, %v1430_v3 }
 0x1e2   : > { %v1323_v22 = vsel %vm1307_vm8, %v1306_v8, %v2373_v49  ;;  %v1322_v39 = vsel %vm1307_vm8, %v1305_v14, %v2372_v42 }
 0x1e3   : > { %v2391_v6 = vpop.permute.xlu1 %2390  ;;  %v1339_v41 = vsel %vm1324_vm9, %v1322_v39, %v2382_v21  ;;  %v1340_v45 = vsel %vm1324_vm9, %v1323_v22, %v2383_v57 }
 0x1e4   : > { %v2393_v29 = vunpack.i.h.bf16 %v2391_v6  ;;  %v2392_v40 = vunpack.i.l.bf16 %v2391_v6  ;;  %v2426_v18 = vpop.permute.xlu2 %2425 }
 0x1e5   : > { %v2427_v26 = vunpack.i.l.bf16 %v2426_v18  ;;  %v2428_v31 = vunpack.i.h.bf16 %v2426_v18 }
 0x1e7   : > { %v2386_v38 = vpop.permute.xlu0 %2385 }
 0x1e8   : > { %v2388_v4 = vunpack.i.h.bf16 %v2386_v38  ;;  %v2387_v20 = vunpack.i.l.bf16 %v2386_v38 }
 0x1ea   : > { %v1356_v34 = vsel %vm1341_vm10, %v1339_v41, %v2387_v20  ;;  %v1357_v33 = vsel %vm1341_vm10, %v1340_v45, %v2388_v4 }
 0x1eb   : > { %v2406_v10 = vpop.permute.xlu1 %2405  ;;  %v1373_v50 = vsel %vm1358_vm11, %v1356_v34, %v2392_v40  ;;  %v1374_v24 = vsel %vm1358_vm11, %v1357_v33, %v2393_v29 }
 0x1ec   : > { %v2408_v30 = vunpack.i.h.bf16 %v2406_v10  ;;  %v2407_v7 = vunpack.i.l.bf16 %v2406_v10  ;;  %v1390_v56 = vsel %vm1375_vm12, %v1373_v50, %v2397_v9  ;;  %v1391_v51 = vsel %vm1375_vm12, %v1374_v24, %v2398_v23  ;;  %v2441_v4 = vpop.permute.xlu2 %2440  ;;  %v1727_v10 = vld [vmem:[%s3302_s20 + $0x20] sm:$0xff]  ;;  %v1728_v23 = vld [vmem:[%s3302_s20 + $0x28] sm:$0xff] }
 0x1ed   : > { %v2443_v29 = vunpack.i.h.bf16 %v2441_v4  ;;  %v2442_v40 = vunpack.i.l.bf16 %v2441_v4  ;;  %v1741_v50 = vpack.c.bf16 %v1728_v23, %v1727_v10  ;;  %v1734_v4 = vld [vmem:[%s3302_s20 + $0x58] sm:$0xff] }
 0x1ef   : > { %v2401_v27 = vpop.permute.xlu0 %2400  ;;  %2054 = vmatmul.msk.bf16.gmra.mxu2 %vm1748_vm1, %v1741_v50  ;;  %v3420_v50 = vld [vmem:[%s3570_s8] ss:$0 sm:$0xff] }
 0x1f0   : > { %v2403_v58 = vunpack.i.h.bf16 %v2401_v27  ;;  %v2402_v52 = vunpack.i.l.bf16 %v2401_v27 }
 0x1f2   : > { %v1407_v28 = vsel %vm1392_vm13, %v1390_v56, %v2402_v52  ;;  %v1408_v35 = vsel %vm1392_vm13, %v1391_v51, %v2403_v58 }
 0x1f3   : > { %v1508_v36 = vpop.f32.mrf.mxu0  ;;  %v1424_v37 = vsel %vm1409_vm14, %v1407_v28, %v2407_v7  ;;  %v1425_v16 = vsel %vm1409_vm14, %v1408_v35, %v2408_v30  ;;  %v2421_v44 = vpop.permute.xlu1 %2420 }
 0x1f4   : > { %v1433_v17 = vpack.c.bf16 %v1425_v16, %v1424_v37  ;;  %v1550_v54 = vmul.f32 %v3340_v59, %v1508_v36  ;;  %v2422_v61 = vunpack.i.l.bf16 %v2421_v44  ;;  %v2423_v63 = vunpack.i.h.bf16 %v2421_v44  ;;  %v1729_v44 = vld [vmem:[%s3302_s20 + $0x30] sm:$0xff] }
 0x1f6   : > { %2042 = vmatmul.msk.bf16.gmra.mxu3 %vm1470_vm15, %v1433_v17  ;;  %v1568_v12 = vadd.f32 %v3352_v32, %v1550_v54  ;;  %v1742_v54 = vpack.c.bf16 %v1730_v11, %v1729_v44 }
 0x1f7   : > { %v2416_v53 = vpop.permute.xlu0 %2415 }
 0x1f8   : > { %v2418_v55 = vunpack.i.h.bf16 %v2416_v53  ;;  %v2417_v47 = vunpack.i.l.bf16 %v2416_v53  ;;  %v1584_v8 = vmax.f32 %v1568_v12, 0.0 }
 0x1fa   : > { %v1318_v62 = vsel %vm1307_vm8, %v1301_v19, %v2417_v47  ;;  %v1319_v3 = vsel %vm1307_vm8, %v1302_v60, %v2418_v55 }
 0x1fb   : > { %v1510_v1 = vpop.f32.mrf.mxu0  ;;  %v1335_v0 = vsel %vm1324_vm9, %v1318_v62, %v2422_v61  ;;  %v1336_v42 = vsel %vm1324_vm9, %v1319_v3, %v2423_v63  ;;  %v2436_v6 = vpop.permute.xlu1 %2435 }
 0x1fc   : > { %v1551_v5 = vmul.f32 %v3340_v59, %v1510_v1  ;;  %v1352_v21 = vsel %vm1341_vm10, %v1335_v0, %v2427_v26  ;;  %v1353_v22 = vsel %vm1341_vm10, %v1336_v42, %v2428_v31  ;;  %v2438_v39 = vunpack.i.h.bf16 %v2436_v6  ;;  %v1731_v31 = vld [vmem:[%s3302_s20 + $0x40] sm:$0xff] }
 0x1fd   : > { %v2437_v38 = vunpack.i.l.bf16 %v2436_v6 }
 0x1fe   : > { %v1569_v49 = vadd.f32 %v3352_v32, %v1551_v5 }
 0x1ff   : > { %v2431_v13 = vpop.permute.xlu0 %2430  ;;  %2055 = vmatmul.msk.bf16.gmra.mxu2 %vm1748_vm1, %v1742_v54 }
 0x200   : > { %v1585_v14 = vmax.f32 %v1569_v49, 0.0  ;;  %v2433_v15 = vunpack.i.h.bf16 %v2431_v13  ;;  %v2432_v57 = vunpack.i.l.bf16 %v2431_v13  ;;  %v1732_v49 = vld [vmem:[%s3302_s20 + $0x48] sm:$0xff] }
 0x201   : > { %v1743_v42 = vpack.c.bf16 %v1732_v49, %v1731_v31 }
 0x202   : > { %v1600_v20 = vpack.c.bf16 %v1585_v14, %v1584_v8  ;;  %v1369_v41 = vsel %vm1358_vm11, %v1352_v21, %v2432_v57  ;;  %v1370_v45 = vsel %vm1358_vm11, %v1353_v22, %v2433_v15 }
 0x203   : > { %v1386_v34 = vsel %vm1375_vm12, %v1369_v41, %v2437_v38  ;;  %v1387_v33 = vsel %vm1375_vm12, %v1370_v45, %v2438_v39  ;;  %v1733_v38 = vld [vmem:[%s3302_s20 + $0x50] sm:$0xff] }
 0x204   : > { %2043 = vmatmul.msk.bf16.vlgmr.msra.gmra.mxu1 %vm1290_vm7, %v1600_v20  ;;  %v1403_v27 = vsel %vm1392_vm13, %v1386_v34, %v2442_v40  ;;  %v1404_v30 = vsel %vm1392_vm13, %v1387_v33, %v2443_v29  ;;  %v1744_v41 = vpack.c.bf16 %v1734_v4, %v1733_v38  ;;  %v1735_v40 = vld [vmem:[%s3302_s20 + $0x60] sm:$0xff]  ;;  %v1736_v34 = vld [vmem:[%s3302_s20 + $0x68] sm:$0xff] }
 0x205   : > { %v1745_v10 = vpack.c.bf16 %v1736_v34, %v1735_v40 }
 0x207   : > { %v2446_v9 = vpop.permute.xlu0 %2445 }
 0x208   : > { %v2448_v24 = vunpack.i.h.bf16 %v2446_v9  ;;  %v2447_v25 = vunpack.i.l.bf16 %v2446_v9  ;;  %v3415_v9 = vld [vmem:[%s3569_s7] ss:$0 sm:$0xff] }
 0x20a   : > { %v1513_v7 = vpop.f32.mrf.mxu0  ;;  %v1420_v58 = vsel %vm1409_vm14, %v1403_v27, %v2447_v25  ;;  %v1421_v52 = vsel %vm1409_vm14, %v1404_v30, %v2448_v24  ;;  %v3426_v24 = vld [vmem:[%s3569_s7 + $0x1] ss:$0 sm:$0xff] }
 0x20b   : > { %v1431_v56 = vpack.c.bf16 %v1421_v52, %v1420_v58  ;;  %v1552_v51 = vmul.f32 %v3340_v59, %v1513_v7 }
 0x20d   : > { %2040 = vmatmul.msk.bf16.gmra.mxu0 %vm1470_vm15, %v1431_v56  ;;  %v1570_v35 = vadd.f32 %v3352_v32, %v1552_v51 }
 0x20f   : > { %v1586_v16 = vmax.f32 %v1570_v35, 0.0  ;;  %2056 = vmatmul.msk.bf16.gmra.mxu2 %vm1748_vm1, %v1743_v42 }
 0x212   : > { %v1515_v28 = vpop.f32.mrf.mxu0 }
 0x213   : > { %v1553_v36 = vmul.f32 %v3340_v59, %v1515_v28  ;;  %v3437_v28 = vld [vmem:[%s3570_s8 + $0x1] ss:$0 sm:$0xff] }
 0x215   : > { %v1571_v37 = vadd.f32 %v3352_v32, %v1553_v36 }
 0x217   : > { %v1587_v43 = vmax.f32 %v1571_v37, 0.0 }
 0x219   : > { %v1601_v17 = vpack.c.bf16 %v1587_v43, %v1586_v16 }
 0x21b   : > { %2044 = vmatmul.msk.bf16.gmra.mxu1 %vm1290_vm7, %v1601_v17 }
 0x21c   : > { %v1518_v2 = vpop.f32.mrf.mxu0 }
 0x21d   : > { %v1554_v46 = vmul.f32 %v3340_v59, %v1518_v2 }
 0x21f   : > { %v1572_v53 = vadd.f32 %v3352_v32, %v1554_v46  ;;  %2057 = vmatmul.msk.bf16.gmra.mxu2 %vm1748_vm1, %v1744_v41 }
 0x221   : > { %v1588_v47 = vmax.f32 %v1572_v53, 0.0 }
 0x224   : > { %v1520_v48 = vpop.f32.mrf.mxu0 }
 0x225   : > { %v1555_v19 = vmul.f32 %v3340_v59, %v1520_v48 }
 0x227   : > { %v1573_v55 = vadd.f32 %v3352_v32, %v1555_v19 }
 0x229   : > { %v1589_v18 = vmax.f32 %v1573_v55, 0.0 }
 0x22b   : > { %v1602_v60 = vpack.c.bf16 %v1589_v18, %v1588_v47 }
 0x22d   : > { %2045 = vmatmul.msk.bf16.gmra.mxu1 %vm1290_vm7, %v1602_v60 }
 0x22f   : > { %2058 = vmatmul.msk.bf16.gmra.mxu2 %vm1748_vm1, %v1745_v10 }
 0x23a   : > { %v1523_v61 = vpop.f32.mrf.mxu0 }
 0x23b   : > { %v1556_v62 = vmul.f32 %v3340_v59, %v1523_v61 }
 0x23d   : > { %v1574_v1 = vadd.f32 %v3352_v32, %v1556_v62  ;;  %v1737_v62 = vld [vmem:[%s3302_s20 + $0x70] sm:$0xff] }
 0x23f   : > { %v1590_v5 = vmax.f32 %v1574_v1, 0.0 }
 0x242   : > { %v1525_v63 = vpop.f32.mrf.mxu0 }
 0x243   : > { %v1557_v12 = vmul.f32 %v3340_v59, %v1525_v63  ;;  %v1738_v63 = vld [vmem:[%s3302_s20 + $0x78] sm:$0xff] }
 0x245   : > { %v1575_v3 = vadd.f32 %v3352_v32, %v1557_v12 }
 0x247   : > { %v1591_v26 = vmax.f32 %v1575_v3, 0.0  ;;  %v1746_v3 = vpack.c.bf16 %v1738_v63, %v1737_v62 }
 0x248   : > { %v1786_v33 = vpop.f32.mrf.mxu2 }
 0x249   : > { %v1603_v0 = vpack.c.bf16 %v1591_v26, %v1590_v5  ;;  %v1828_v52 = vmul.f32 %v3420_v50, %v1786_v33 }
 0x24b   : > { %2046 = vmatmul.msk.bf16.gmra.mxu1 %vm1290_vm7, %v1603_v0 }
 0x250   : > { %v3400_v14 = vpop.f32.mrf.mxu3  ;;  %v1788_v16 = vpop.f32.mrf.mxu2 }
 0x251   : > { %v1829_v11 = vmul.f32 %v3420_v50, %v1788_v16 }
 0x258   : > { %v1540_v45 = vpop.f32.mrf.mxu3 }
 0x25e   : > { %v1528_v13 = vpop.f32.mrf.mxu0 }
 0x25f   : > { %v1558_v6 = vmul.f32 %v3340_v59, %v1528_v13 }
 0x261   : > { %v1576_v15 = vadd.f32 %v3352_v32, %v1558_v6  ;;  %v1791_v1 = vpop.f32.mrf.mxu2  ;;  %v1563_v6 = vmul.f32 %v3340_v59, %v1540_v45 }
 0x262   : > { %v1830_v49 = vmul.f32 %v3420_v50, %v1791_v1 }
 0x263   : > { %v1592_v22 = vmax.f32 %v1576_v15, 0.0 }
 0x266   : > { %v1530_v8 = vpop.f32.mrf.mxu0 }
 0x267   : > { %v1559_v57 = vmul.f32 %v3340_v59, %v1530_v8 }
 0x269   : > { %v1577_v21 = vadd.f32 %v3352_v32, %v1559_v57  ;;  %v1793_v15 = vpop.f32.mrf.mxu2  ;;  %v1562_v57 = vmul.f32 %v3340_v59, %v3400_v14 }
 0x26b   : > { %v1593_v39 = vmax.f32 %v1577_v21, 0.0  ;;  %v1580_v41 = vadd.f32 %v3352_v32, %v1562_v57 }
 0x26d   : > { %v1604_v20 = vpack.c.bf16 %v1593_v39, %v1592_v22  ;;  %v1581_v39 = vadd.f32 %v3352_v32, %v1563_v6  ;;  %v1596_v14 = vmax.f32 %v1580_v41, 0.0 }
 0x26f   : > { %2047 = vmatmul.msk.bf16.gmra.mxu1 %vm1290_vm7, %v1604_v20  ;;  %v1831_v20 = vmul.f32 %v3420_v50, %v1793_v15 }
 0x279   : > { %v1543_v29 = vpop.f32.mrf.mxu3 }
 0x27a   : > { %v1564_v23 = vmul.f32 %v3340_v59, %v1543_v29  ;;  %v1597_v29 = vmax.f32 %v1581_v39, 0.0 }
 0x27c   : > { %v1582_v30 = vadd.f32 %v3352_v32, %v1564_v23  ;;  %v1606_v10 = vpack.c.bf16 %v1597_v29, %v1596_v14 }
 0x27e   : > { %v1598_v35 = vmax.f32 %v1582_v30, 0.0 }
 0x281   : > { %v1545_v25 = vpop.f32.mrf.mxu3  ;;  %v1645_v27 = vpop.f32.mrf.mxu1 }
 0x282   : > { %v1565_v7 = vmul.f32 %v3340_v59, %v1545_v25  ;;  %v1687_v58 = vmul.f32 %v3415_v9, %v1645_v27 }
 0x284   : > { %v1583_v56 = vadd.f32 %v3352_v32, %v1565_v7  ;;  %v1705_v51 = vadd.f32 %v3426_v24, %v1687_v58 }
 0x286   : > { %v1599_v36 = vmax.f32 %v1583_v56, 0.0  ;;  %v1844_v37 = vadd.f32 %v1828_v52, %v1705_v51 }
 0x288   : > { %v1607_v43 = vpack.c.bf16 %v1599_v36, %v1598_v35  ;;  %v1862_v17 = vadd.f32 %v3437_v28, %v1844_v37 }
 0x289   : > { %v1647_v2 = vpop.f32.mrf.mxu1 }
 0x28a   : > { %v1878_v46 = vmax.f32 %v1862_v17, 0.0  ;;  %v1688_v48 = vmul.f32 %v3415_v9, %v1647_v2  ;;  %v1533_v44 = vpop.f32.mrf.mxu0  ;;  %2050 = vmatmul.msk.bf16.vlgmr.msrb.gmra.mxu3 %vm1290_vm7, %v1607_v43 }
 0x28b   : > { %v1560_v54 = vmul.f32 %v3340_v59, %v1533_v44 }
 0x28c   : > { %1894 = vst.msk [vmem:[%s2595_s26] sm:$0xff] %vm1341_vm10, %v1878_v46  ;;  %v1706_v53 = vadd.f32 %v3426_v24, %v1688_v48 }
 0x28d   : > { %v1578_v60 = vadd.f32 %v3352_v32, %v1560_v54 }
 0x28e   : > { %v1845_v19 = vadd.f32 %v1829_v11, %v1706_v53 }
 0x28f   : > { %v1594_v5 = vmax.f32 %v1578_v60, 0.0 }
 0x290   : > { %v1863_v55 = vadd.f32 %v3437_v28, %v1845_v19 }
 0x292   : > { %v1879_v47 = vmax.f32 %v1863_v55, 0.0  ;;  %v1535_v18 = vpop.f32.mrf.mxu0 }
 0x293   : > { %v1561_v61 = vmul.f32 %v3340_v59, %v1535_v18  ;;  %v1796_v59 = vpop.f32.mrf.mxu2 }
 0x294   : > { %1895 = vst.msk [vmem:[%s2595_s26 + $0x8] sm:$0xff] %vm1341_vm10, %v1879_v47 }
 0x295   : > { %v1579_v12 = vadd.f32 %v3352_v32, %v1561_v61  ;;  %v1832_v32 = vmul.f32 %v3420_v50, %v1796_v59 }
 0x297   : > { %v1595_v26 = vmax.f32 %v1579_v12, 0.0 }
 0x298   : > { %v1650_v0 = vpop.f32.mrf.mxu1 }
 0x299   : > { %v1689_v31 = vmul.f32 %v3415_v9, %v1650_v0  ;;  %v1605_v42 = vpack.c.bf16 %v1595_v26, %v1594_v5 }
 0x29a   : > { %2059 = vmatmul.msk.bf16.vlgmr.msra.gmra.mxu3 %vm1748_vm1, %v1746_v3 }
 0x29b   : > { %v1707_v13 = vadd.f32 %v3426_v24, %v1689_v31  ;;  %2048 = vmatmul.msk.bf16.gmra.mxu1 %vm1290_vm7, %v1605_v42  ;;  %v1798_v7 = vpop.f32.mrf.mxu2 }
 0x29c   : > { %v1833_v35 = vmul.f32 %v3420_v50, %v1798_v7 }
 0x29d   : > { %v1846_v8 = vadd.f32 %v1830_v49, %v1707_v13 }
 0x29f   : > { %v1864_v21 = vadd.f32 %v3437_v28, %v1846_v8 }
 0x2a0   : > { %v1652_v22 = vpop.f32.mrf.mxu1 }
 0x2a1   : > { %v1880_v38 = vmax.f32 %v1864_v21, 0.0  ;;  %v1690_v4 = vmul.f32 %v3415_v9, %v1652_v22 }
 0x2a3   : > { %1896 = vst.msk [vmem:[%s2595_s26 + $0x10] sm:$0xff] %vm1341_vm10, %v1880_v38  ;;  %v1708_v45 = vadd.f32 %v3426_v24, %v1690_v4  ;;  %v1801_v17 = vpop.f32.mrf.mxu2 }
 0x2a4   : > { %v1834_v48 = vmul.f32 %v3420_v50, %v1801_v17 }
 0x2a5   : > { %v1847_v40 = vadd.f32 %v1831_v20, %v1708_v45 }
 0x2a7   : > { %v1865_v34 = vadd.f32 %v3437_v28, %v1847_v40 }
 0x2a9   : > { %v1881_v33 = vmax.f32 %v1865_v34, 0.0 }
 0x2aa   : > { %v1655_v23 = vpop.f32.mrf.mxu1 }
 0x2ab   : > { %1897 = vst.msk [vmem:[%s2595_s26 + $0x18] sm:$0xff] %vm1341_vm10, %v1881_v33  ;;  %v1691_v25 = vmul.f32 %v3415_v9, %v1655_v23  ;;  %2049 = vmatmul.msk.bf16.gmra.mxu1 %vm1290_vm7, %v1606_v10  ;;  %v1803_v53 = vpop.f32.mrf.mxu2 }
 0x2ac   : > { %v1835_v18 = vmul.f32 %v3420_v50, %v1803_v53 }
 0x2ad   : > { %v1709_v27 = vadd.f32 %v3426_v24, %v1691_v25 }
 0x2af   : > { %v1848_v30 = vadd.f32 %v1832_v32, %v1709_v27 }
 0x2b1   : > { %v1866_v58 = vadd.f32 %v3437_v28, %v1848_v30 }
 0x2b2   : > { %v1657_v52 = vpop.f32.mrf.mxu1 }
 0x2b3   : > { %v1882_v56 = vmax.f32 %v1866_v58, 0.0  ;;  %v1692_v51 = vmul.f32 %v3415_v9, %v1657_v52  ;;  %v1806_v1 = vpop.f32.mrf.mxu2 }
 0x2b4   : > { %v1836_v5 = vmul.f32 %v3420_v50, %v1806_v1 }
 0x2b5   : > { %1898 = vst.msk [vmem:[%s2595_s26 + $0x20] sm:$0xff] %vm1341_vm10, %v1882_v56  ;;  %v1710_v36 = vadd.f32 %v3426_v24, %v1692_v51 }
 0x2b7   : > { %v1849_v37 = vadd.f32 %v1833_v35, %v1710_v36 }
 0x2b9   : > { %v1867_v16 = vadd.f32 %v3437_v28, %v1849_v37 }
 0x2bb   : > { %v1883_v43 = vmax.f32 %v1867_v16, 0.0  ;;  %v1808_v31 = vpop.f32.mrf.mxu2 }
 0x2bc   : > { %v1837_v8 = vmul.f32 %v3420_v50, %v1808_v31 }
 0x2bd   : > { %1899 = vst.msk [vmem:[%s2595_s26 + $0x28] sm:$0xff] %vm1341_vm10, %v1883_v43 }
 0x2c3   : > { %v1811_v38 = vpop.f32.mrf.mxu2 }
 0x2c4   : > { %v1838_v41 = vmul.f32 %v3420_v50, %v1811_v38 }
 0x2c8   : > { %v1660_v2 = vpop.f32.mrf.mxu1 }
 0x2c9   : > { %v1693_v46 = vmul.f32 %v3415_v9, %v1660_v2 }
 0x2cb   : > { %v1711_v44 = vadd.f32 %v3426_v24, %v1693_v46  ;;  %v1813_v59 = vpop.f32.mrf.mxu2 }
 0x2cc   : > { %v1839_v52 = vmul.f32 %v3420_v50, %v1813_v59 }
 0x2cd   : > { %v1850_v11 = vadd.f32 %v1834_v48, %v1711_v44 }
 0x2cf   : > { %v1868_v19 = vadd.f32 %v3437_v28, %v1850_v11 }
 0x2d0   : > { %v1662_v54 = vpop.f32.mrf.mxu1 }
 0x2d1   : > { %v1884_v55 = vmax.f32 %v1868_v19, 0.0  ;;  %v1694_v47 = vmul.f32 %v3415_v9, %v1662_v54 }
 0x2d3   : > { %1900 = vst.msk [vmem:[%s2595_s26 + $0x30] sm:$0xff] %vm1341_vm10, %v1884_v55  ;;  %v1712_v60 = vadd.f32 %v3426_v24, %v1694_v47  ;;  %v1816_v16 = vpop.f32.mrf.mxu2 }
 0x2d4   : > { %v1840_v44 = vmul.f32 %v3420_v50, %v1816_v16 }
 0x2d5   : > { %v1851_v61 = vadd.f32 %v1835_v18, %v1712_v60 }
 0x2d7   : > { %v1869_v62 = vadd.f32 %v3437_v28, %v1851_v61 }
 0x2d9   : > { %v1885_v63 = vmax.f32 %v1869_v62, 0.0 }
 0x2db   : > { %1901 = vst.msk [vmem:[%s2595_s26 + $0x38] sm:$0xff] %vm1341_vm10, %v1885_v63  ;;  %v1818_v18 = vpop.f32.mrf.mxu2 }
 0x2dc   : > { %v1841_v63 = vmul.f32 %v3420_v50, %v1818_v18 }
 0x2ec   : > { %v1665_v12 = vpop.f32.mrf.mxu1 }
 0x2ed   : > { %v1695_v3 = vmul.f32 %v3415_v9, %v1665_v12 }
 0x2ef   : > { %v1713_v26 = vadd.f32 %v3426_v24, %v1695_v3 }
 0x2f1   : > { %v1852_v0 = vadd.f32 %v1836_v5, %v1713_v26 }
 0x2f3   : > { %v1870_v49 = vadd.f32 %v3437_v28, %v1852_v0 }
 0x2f4   : > { %v1667_v42 = vpop.f32.mrf.mxu1 }
 0x2f5   : > { %v1886_v13 = vmax.f32 %v1870_v49, 0.0  ;;  %v1696_v6 = vmul.f32 %v3415_v9, %v1667_v42 }
 0x2f7   : > { %1902 = vst.msk [vmem:[%s2595_s26 + $0x40] sm:$0xff] %vm1341_vm10, %v1886_v13  ;;  %v1714_v15 = vadd.f32 %v3426_v24, %v1696_v6 }
 0x2f9   : > { %v1853_v57 = vadd.f32 %v1837_v8, %v1714_v15 }
 0x2fb   : > { %v1871_v21 = vadd.f32 %v3437_v28, %v1853_v57 }
 0x2fd   : > { %v1887_v22 = vmax.f32 %v1871_v21, 0.0 }
 0x2ff   : > { %1903 = vst.msk [vmem:[%s2595_s26 + $0x48] sm:$0xff] %vm1341_vm10, %v1887_v22 }
 0x30d   : > { %v1680_v39 = vpop.f32.mrf.mxu3 }
 0x30e   : > { %v1701_v29 = vmul.f32 %v3415_v9, %v1680_v39 }
 0x310   : > { %v1719_v33 = vadd.f32 %v3426_v24, %v1701_v29 }
 0x315   : > { %v1682_v4 = vpop.f32.mrf.mxu3 }
 0x316   : > { %v1702_v7 = vmul.f32 %v3415_v9, %v1682_v4 }
 0x318   : > { %v1670_v20 = vpop.f32.mrf.mxu1  ;;  %v1720_v37 = vadd.f32 %v3426_v24, %v1702_v7 }
 0x319   : > { %v1697_v45 = vmul.f32 %v3415_v9, %v1670_v20 }
 0x31b   : > { %v1715_v40 = vadd.f32 %v3426_v24, %v1697_v45 }
 0x31d   : > { %v1854_v14 = vadd.f32 %v1838_v41, %v1715_v40  ;;  %v1821_v34 = vpop.f32.mrf.mxu3 }
 0x31e   : > { %v1842_v10 = vmul.f32 %v3420_v50, %v1821_v34 }
 0x31f   : > { %v1872_v23 = vadd.f32 %v3437_v28, %v1854_v14 }
 0x320   : > { %v1858_v25 = vadd.f32 %v1842_v10, %v1719_v33  ;;  %v1672_v32 = vpop.f32.mrf.mxu1 }
 0x321   : > { %v1888_v27 = vmax.f32 %v1872_v23, 0.0  ;;  %v1698_v30 = vmul.f32 %v3415_v9, %v1672_v32 }
 0x322   : > { %v1876_v58 = vadd.f32 %v3437_v28, %v1858_v25 }
 0x323   : > { %1904 = vst.msk [vmem:[%s2595_s26 + $0x50] sm:$0xff] %vm1341_vm10, %v1888_v27  ;;  %v1716_v56 = vadd.f32 %v3426_v24, %v1698_v30 }
 0x324   : > { %v1892_v51 = vmax.f32 %v1876_v58, 0.0 }
 0x325   : > { %v1855_v35 = vadd.f32 %v1839_v52, %v1716_v56  ;;  %v1823_v36 = vpop.f32.mrf.mxu3 }
 0x326   : > { %1908 = vst.msk [vmem:[%s2595_s26 + $0x70] sm:$0xff] %vm1341_vm10, %v1892_v51  ;;  %v1843_v43 = vmul.f32 %v3420_v50, %v1823_v36 }
 0x327   : > { %v1873_v17 = vadd.f32 %v3437_v28, %v1855_v35 }
 0x328   : > { %v1859_v2 = vadd.f32 %v1843_v43, %v1720_v37  ;;  %v1675_v46 = vpop.f32.mrf.mxu1 }
 0x329   : > { %v1889_v48 = vmax.f32 %v1873_v17, 0.0  ;;  %v1699_v11 = vmul.f32 %v3415_v9, %v1675_v46 }
 0x32a   : > { %v1877_v53 = vadd.f32 %v3437_v28, %v1859_v2 }
 0x32b   : > { %1905 = vst.msk [vmem:[%s2595_s26 + $0x58] sm:$0xff] %vm1341_vm10, %v1889_v48  ;;  %v1717_v19 = vadd.f32 %v3426_v24, %v1699_v11 }
 0x32c   : > { %v1893_v54 = vmax.f32 %v1877_v53, 0.0 }
 0x32d   : > { %v1856_v55 = vadd.f32 %v1840_v44, %v1717_v19 }
 0x32e   : > { %1909 = vst.msk [vmem:[%s2595_s26 + $0x78] sm:$0xff] %vm1341_vm10, %v1893_v54 }
 0x32f   : > { %v1874_v47 = vadd.f32 %v3437_v28, %v1856_v55 }
 0x330   : > { %v1677_v60 = vpop.f32.mrf.mxu1 }
 0x331   : > { %v1890_v61 = vmax.f32 %v1874_v47, 0.0  ;;  %v1700_v62 = vmul.f32 %v3415_v9, %v1677_v60 }
 0x333   : > { %1906 = vst.msk [vmem:[%s2595_s26 + $0x60] sm:$0xff] %vm1341_vm10, %v1890_v61  ;;  %v1718_v1 = vadd.f32 %v3426_v24, %v1700_v62 }
 0x335   : > { %v1857_v12 = vadd.f32 %v1841_v63, %v1718_v1 }
 0x337   : > { %v1875_v3 = vadd.f32 %v3437_v28, %v1857_v12 }
 0x339   : > { %v1891_v5 = vmax.f32 %v1875_v3, 0.0 }
 0x33b   : > { %1907 = vst.msk [vmem:[%s2595_s26 + $0x68] sm:$0xff] %vm1341_vm10, %v1891_v5 }
 0x33c PF: > { %s19_s13 = sadd.s32 1, %s2493_s13   ;;  %s3572_s30 = smov %s2485_s11 }
 0x33d   : > { %p16_p8 = scmp.ge.s32.totalorder %s19_s13, 6   ;;  %s3573_s10 = smov %s2489_s12 }
 0x33e   : > { %s3574_s11 = smov %s3577_s14  ;;  %s3575_s12 = smov %s3581_s15 }
 0x33f   :  { %18 = sbr.rel (!%p16_p8) target bundleno = 3 (0x3), region = 93 }

</bundles_post_ra>
